<compile_context>
chip_gen: v7x
topology: tpu7x:2x2x1
jax: 0.10.0
libtpu: 0.0.40
codegen_flags: <defaults>
</compile_context>

<pallas_src>
import functools

import jax
import jax.numpy as jnp
from jax.experimental import pallas as pl
from jax.experimental.pallas import tpu as pltpu


_INV_SQRT2 = 0.7071067811865476
_MASK_BIAS = -1e30   # large finite negative: fully-masked rows give uniform
                     # attention instead of the reference's NaN (documented
                     # intentional divergence; not exercised by the test).


def _erf_approx(x):
    # Abramowitz & Stegun 7.1.26 rational approximation (|err| < 1.5e-7).
    # Built only from ops with guaranteed Mosaic lowerings.
    a1, a2, a3, a4, a5 = (0.254829592, -0.284496736, 1.421413741,
                          -1.453152027, 1.061405429)
    p = 0.3275911
    sgn = jnp.where(x >= 0.0, 1.0, -1.0)
    ax = jnp.abs(x)
    t = 1.0 / (1.0 + p * ax)
    poly = ((((a5 * t + a4) * t + a3) * t + a2) * t + a1) * t
    return sgn * (1.0 - poly * jnp.exp(-ax * ax))


def _gelu_exact(x):
    # erf-based GELU (matches torch.nn.GELU() default up to ~1.5e-7 erf error).
    # TODO(synk): if VALU-bound on v5e, switch to tanh-approx GELU (EUP slot).
    return 0.5 * x * (1.0 + _erf_approx(x * _INV_SQRT2))


def _layer_norm(x, gamma, beta, eps):
    mu = jnp.mean(x, axis=-1, keepdims=True)
    xc = x - mu
    var = jnp.mean(xc * xc, axis=-1, keepdims=True)
    return xc * jax.lax.rsqrt(var + eps) * gamma + beta


# ---------------------------------------------------------------------------
# Pallas kernel: one full transformer layer for one batch row per grid step.
# ---------------------------------------------------------------------------
def _transformer_layer_kernel(
    x_ref, bias_ref, wqkv_ref, wo_ref, bo_ref, g1_ref, be1_ref,
    w1_ref, b1_ref, w2_ref, b2_ref, g2_ref, be2_ref,
    o_ref, ctx_ref,
    *, num_heads, head_dim, ln_eps, compute_dtype):
    f32 = jnp.float32
    cd = compute_dtype
    x = x_ref[0]                                   # (N, D) f32
    N = x.shape[0]
    hd = num_heads * head_dim

    # Additive mask bias, broadcast ONCE (hoisted out of the unrolled head
    # loop: JAX does not CSE broadcast_in_dim).
    bias_nn = jnp.broadcast_to(bias_ref[0], (N, N))    # (N, N) f32

    # ---- fused QKV projection: one wide matmul over all heads --------------
    qkv = jnp.dot(x.astype(cd), wqkv_ref[...],
                  preferred_element_type=f32)      # (N, 3*H*d) f32 accumulate
    # layout is [q_all | k_all | v_all] (head-major inside each segment);
    # softmax scale is already folded into the q weight columns at pack time.
    q_all = qkv[:, :hd]
    k_all = qkv[:, hd:2 * hd]
    v_all = qkv[:, 2 * hd:]

    # ---- per-head attention, context written into a VMEM scratch slab ------
    for h in range(num_heads):                     # static, small H
        lo, hi = h * head_dim, (h + 1) * head_dim
        qh = q_all[:, lo:hi].astype(cd)
        kh = k_all[:, lo:hi].astype(cd)
        vh = v_all[:, lo:hi].astype(cd)
        # contract on the last dims directly -- no materialized k.T
        s = jax.lax.dot_general(qh, kh, (((1,), (1,)), ((), ())),
                                preferred_element_type=f32)        # (N, N)
        s = s + bias_nn
        m = jnp.max(s, axis=-1, keepdims=True)
        e = jnp.exp(s - m)
        den = jnp.sum(e, axis=-1, keepdims=True)
        inv = pl.reciprocal(den, approx=True)      # EUP slot
        inv = inv * (2.0 - den * inv)              # one Newton step -> ~f32 acc
        # normalize AFTER the PV matmul: (N,d) multiply instead of (N,N)
        ctx_h = jnp.dot(e.astype(cd), vh, preferred_element_type=f32) * inv
        ctx_ref[:, lo:hi] = ctx_h                  # bound live range per head

    attn_out = ctx_ref[...]                        # (N, H*d) f32, lane-dense

    # ---- attention output projection + residual + LayerNorm ----------------
    # (dropout is the identity in eval/inference mode)
    proj = jnp.dot(attn_out.astype(cd), wo_ref[...],
                   preferred_element_type=f32) + bo_ref[...]
    att = _layer_norm(proj + x, g1_ref[...], be1_ref[...], ln_eps)

    # ---- feed-forward + residual + LayerNorm --------------------------------
    f = jnp.dot(att.astype(cd), w1_ref[...],
                preferred_element_type=f32) + b1_ref[...]
    f = _gelu_exact(f)
    f = jnp.dot(f.astype(cd), w2_ref[...],
                preferred_element_type=f32) + b2_ref[...]
    out = _layer_norm(att + f, g2_ref[...], be2_ref[...], ln_eps)

    o_ref[0] = out.astype(o_ref.dtype)


def transformer_layer_pallas(x, mask_bias, params, *, num_heads, ln_eps,
                             compute_dtype=jnp.bfloat16):
    """One transformer layer. x: (B,N,D) f32, mask_bias: (B,1,N) f32."""
    B, N, D = x.shape
    head_dim = D // num_heads
    F = params['w1'].shape[1]                      # intermediate size

    # MXU operands cast once here (bf16 default: ~2x MXU rate on v5e/v6e/v7x
    # and half the weight DMA / VMEM bytes); biases / LN params stay f32.
    wqkv = params['wqkv'].astype(compute_dtype)
    wo = params['wo'].astype(compute_dtype)
    w1 = params['w1'].astype(compute_dtype)
    w2 = params['w2'].astype(compute_dtype)

    operands = (x, mask_bias, wqkv, wo, params['bo'], params['g1'],
                params['be1'], w1, params['b1'], w2, params['b2'],
                params['g2'], params['be2'])

    kernel = functools.partial(
        _transformer_layer_kernel, num_heads=num_heads, head_dim=head_dim,
        ln_eps=ln_eps, compute_dtype=compute_dtype)

    # advisory cost estimate for XLA's scheduler around the custom call
    flops = (2 * B * N * D * (3 * D + D + 2 * F)
             + 4 * B * num_heads * N * N * head_dim)
    transcendentals = B * num_heads * N * (N + 1) + B * N * (F + 2)
    io_bytes = (sum(int(a.size) * a.dtype.itemsize for a in operands)
                + B * N * D * x.dtype.itemsize)
    cost = pl.CostEstimate(flops=int(flops),
                           transcendentals=int(transcendentals),
                           bytes_accessed=int(io_bytes))

    # explicit VMEM budget: resident weights (+double-buffered activations,
    # scores, FFN intermediate) with headroom, clamped to [32 MiB, 64 MiB]
    # so it is safe on every chip (v7x has 64 MiB per TensorCore).
    weight_bytes = sum(int(a.size) * a.dtype.itemsize for a in operands[2:])
    est = (2 * weight_bytes + 8 * N * N * 4
           + 16 * N * max(D, F) * 4 + (4 << 20))
    vmem_limit = int(min(max(est, 32 << 20), 64 << 20))

    def _run(single_buffer_weights):
        def _resident(a):
            kwargs = {}
            if single_buffer_weights:
                # constant-index weights: no double buffering -> ~half VMEM
                kwargs = dict(pipeline_mode=pl.Buffered(1))
            return pl.BlockSpec(a.shape, lambda b, n=a.ndim: (0,) * n, **kwargs)

        in_specs = [
            pl.BlockSpec((1, N, D), lambda b: (b, 0, 0)),   # hidden states
            pl.BlockSpec((1, 1, N), lambda b: (b, 0, 0)),   # additive mask bias
        ] + [_resident(a) for a in operands[2:]]            # weights: resident

        return pl.pallas_call(
            kernel,
            out_shape=jax.ShapeDtypeStruct((B, N, D), x.dtype),
            grid_spec=pltpu.PrefetchScalarGridSpec(
                num_scalar_prefetch=0,
                grid=(B,),                                  # one fat step / row
                in_specs=in_specs,
                out_specs=pl.BlockSpec((1, N, D), lambda b: (b, 0, 0)),
                scratch_shapes=[pltpu.VMEM((N, num_heads * head_dim),
                                           jnp.float32)],  # ctx slab
            ),
            compiler_params=pltpu.CompilerParams(
                # >=2 parallel steps -> shards across v7x's 2 TensorCores
                dimension_semantics=("parallel",),
                vmem_limit_bytes=vmem_limit,
            ),
            cost_estimate=cost,
        )(*operands)

    try:
        return _run(single_buffer_weights=True)
    except Exception:
        # pl.Buffered(1) (single-buffered resident weights) not supported on
        # this jax version -> fall back to default double buffering.
        return _run(single_buffer_weights=False)


def transformer_encoder_pallas(x, attention_mask, layer_params, *, num_heads,
                               ln_eps, compute_dtype=jnp.bfloat16):
    # additive mask bias: 0 where attended, -1e30 where masked (large finite
    # negative -> no -inf/NaN hazard even for fully-masked rows)
    mask_bias = jnp.where(attention_mask == 0, _MASK_BIAS, 0.0).astype(jnp.float32)
    mask_bias = mask_bias[:, None, :]               # (B, 1, N)
    h = x
    for p in layer_params:
        h = transformer_layer_pallas(h, mask_bias, p, num_heads=num_heads,
                                     ln_eps=ln_eps, compute_dtype=compute_dtype)
    return h


# ---------------------------------------------------------------------------
# Parameter packing (PyTorch layout -> kernel layout) and pure-JAX reference.
# ---------------------------------------------------------------------------
def pack_layer_params(raw, num_heads):
    """raw weights use torch layouts; pack for the fused kernel."""
    w_heads = raw['w_heads']                       # (H, 3*d, D), per-head Linear
    H = num_heads
    threed, D = w_heads.shape[1], w_heads.shape[2]
    d = threed // 3
    # NOTE: the module scales by input_dim ** -0.5 (NOT head_dim ** -0.5);
    # it is folded into the q weight columns here (free, host-side, one-time).
    scale = float(D) ** (-0.5)
    w_t = jnp.transpose(w_heads, (0, 2, 1))        # (H, D, 3d): per-head [q|k|v]

    def head_major(seg):                           # (H, D, d) -> (D, H*d)
        return jnp.transpose(seg, (1, 0, 2)).reshape(D, H * d)

    wq = head_major(w_t[:, :, :d]) * scale         # softmax scale folded in
    wk = head_major(w_t[:, :, d:2 * d])
    wv = head_major(w_t[:, :, 2 * d:])
    return dict(
        wqkv=jnp.concatenate([wq, wk, wv], axis=1),    # (D, 3*H*d)
        wo=raw['wo'].T, bo=raw['bo'][None, :],
        g1=raw['g1'][None, :], be1=raw['be1'][None, :],
        w1=raw['w1'].T, b1=raw['b1'][None, :],
        w2=raw['w2'].T, b2=raw['b2'][None, :],
        g2=raw['g2'][None, :], be2=raw['be2'][None, :],
    )


def transformer_layer_ref(x, attention_mask, raw, *, num_heads, ln_eps):
    """Pure-JAX mirror of the PyTorch TransformerLayer.forward (eval mode)."""
    B, N, D = x.shape
    d = D // num_heads
    scale = float(D) ** (-0.5)
    qkv = jnp.einsum('bnd,hkd->hbnk', x, raw['w_heads'])       # (H,B,N,3d)
    q = jnp.transpose(qkv[..., :d], (1, 0, 2, 3))              # (B,H,N,d)
    k = jnp.transpose(qkv[..., d:2 * d], (1, 0, 2, 3))
    v = jnp.transpose(qkv[..., 2 * d:], (1, 0, 2, 3))
    scores = jnp.einsum('bhid,bhjd->bhij', q, k) * scale
    scores = jnp.where(attention_mask[:, None, None, :] == 0, -jnp.inf, scores)
    attn = jax.nn.softmax(scores, axis=-1)
    res = jnp.einsum('bhij,bhjd->bhid', attn, v)
    attn_out = jnp.transpose(res, (0, 2, 1, 3)).reshape(B, N, D)
    proj = attn_out @ raw['wo'].T + raw['bo']
    att = _layer_norm(proj + x, raw['g1'], raw['be1'], ln_eps)
    f = att @ raw['w1'].T + raw['b1']
    f = jax.nn.gelu(f, approximate=False)                      # exact erf GELU
    f = f @ raw['w2'].T + raw['b2']
    return _layer_norm(att + f, raw['g2'], raw['be2'], ln_eps)


def transformer_encoder_ref(x, attention_mask, raw_layers, *, num_heads, ln_eps):
    h = x
    for raw in raw_layers:
        h = transformer_layer_ref(h, attention_mask, raw,
                                  num_heads=num_heads, ln_eps=ln_eps)
    return h


if __name__ == "__main__":
    # config: hidden=32, heads=4 (head_dim=8), intermediate=64, 2 layers
    # NOTE: this toy shape (last dim 32 < 128) is a correctness config only;
    # do not benchmark at this size (25% lane utilization, fixed-overhead bound).
    hidden_size = 32
    num_heads = 4
    head_dim = hidden_size // num_heads
    intermediate_size = 64
    num_layers = 2
    ln_eps = 1e-12
    B, N = 2, 8

    key = jax.random.PRNGKey(0)
    key, kx = jax.random.split(key)
    x = jax.random.normal(kx, (B, N, hidden_size), dtype=jnp.float32)

    attention_mask = jnp.ones((B, N), dtype=jnp.int32)
    attention_mask = attention_mask.at[1, -2:].set(0)   # mask 2 keys in row 1

    raw_layers = []
    for _ in range(num_layers):
        key, k1, k2, k3, k4, k5, k6, k7 = jax.random.split(key, 8)
        raw_layers.append(dict(
            # per-head nn.Linear(hidden, 3*head_dim, bias=False).weight: (3d, D)
            w_heads=jax.random.normal(
                k1, (num_heads, 3 * head_dim, hidden_size), jnp.float32)
                * hidden_size ** -0.5,
            wo=jax.random.normal(k2, (hidden_size, hidden_size), jnp.float32)
                * hidden_size ** -0.5,
            bo=jax.random.normal(k3, (hidden_size,), jnp.float32) * 0.02,
            g1=jnp.ones((hidden_size,), jnp.float32),
            be1=jnp.zeros((hidden_size,), jnp.float32),
            w1=jax.random.normal(k4, (intermediate_size, hidden_size),
                                 jnp.float32) * hidden_size ** -0.5,
            b1=jax.random.normal(k5, (intermediate_size,), jnp.float32) * 0.02,
            w2=jax.random.normal(k6, (hidden_size, intermediate_size),
                                 jnp.float32) * intermediate_size ** -0.5,
            b2=jax.random.normal(k7, (hidden_size,), jnp.float32) * 0.02,
            g2=jnp.ones((hidden_size,), jnp.float32),
            be2=jnp.zeros((hidden_size,), jnp.float32),
        ))

    packed = [pack_layer_params(r, num_heads) for r in raw_layers]

    ref = transformer_encoder_ref(x, attention_mask, raw_layers,
                                  num_heads=num_heads, ln_eps=ln_eps)

    # ---- strict check: f32 MXU operands -------------------------------------
    out_f32 = transformer_encoder_pallas(
        x, attention_mask, packed, num_heads=num_heads, ln_eps=ln_eps,
        compute_dtype=jnp.float32)
    out_f32 = jax.block_until_ready(out_f32)
    assert out_f32.shape == (B, N, hidden_size)
    err_f32 = float(jnp.max(jnp.abs(out_f32 - ref)))
    assert jnp.allclose(out_f32, ref, atol=2e-4, rtol=2e-4), (
        f"f32 mismatch vs reference, max abs err = {err_f32}")

    # ---- default path: bf16 MXU operands (f32 accumulate / softmax / LN) ----
    out_bf16 = transformer_encoder_pallas(
        x, attention_mask, packed, num_heads=num_heads, ln_eps=ln_eps)
    out_bf16 = jax.block_until_ready(out_bf16)
    err_bf16 = float(jnp.max(jnp.abs(out_bf16 - ref)))
    assert jnp.allclose(out_bf16, ref, atol=2e-1, rtol=2e-1), (
        f"bf16 mismatch vs reference, max abs err = {err_bf16}")

    print("KERNEL_OK")
</pallas_src>

<mosaic_0001>
module attributes {stable_mosaic.version = 11 : i64} {
  func.func @_transformer_layer_kernel(%arg0: i32, %arg1: memref<1x8x32xf32, #tpu.memory_space<vmem>>, %arg2: memref<1x1x8xf32, #tpu.memory_space<vmem>>, %arg3: memref<32x96xf32, #tpu.memory_space<vmem>>, %arg4: memref<32x32xf32, #tpu.memory_space<vmem>>, %arg5: memref<1x32xf32, #tpu.memory_space<vmem>>, %arg6: memref<1x32xf32, #tpu.memory_space<vmem>>, %arg7: memref<1x32xf32, #tpu.memory_space<vmem>>, %arg8: memref<32x64xf32, #tpu.memory_space<vmem>>, %arg9: memref<1x64xf32, #tpu.memory_space<vmem>>, %arg10: memref<64x32xf32, #tpu.memory_space<vmem>>, %arg11: memref<1x32xf32, #tpu.memory_space<vmem>>, %arg12: memref<1x32xf32, #tpu.memory_space<vmem>>, %arg13: memref<1x32xf32, #tpu.memory_space<vmem>>, %arg14: memref<1x8x32xf32, #tpu.memory_space<vmem>>, %arg15: memref<8x32xf32, #tpu.memory_space<vmem>>) attributes {dimension_semantics = [#tpu.dimension_semantics<parallel>], iteration_bounds = array<i64: 2>, scalar_prefetch = 0 : i64, scratch_operands = 1 : i64, tpu.core_type = #tpu.core_type<tc>, window_params = [{transform_indices = @transform_0, window_bounds = array<i64: 1, 8, 32>}, {transform_indices = @transform_1, window_bounds = array<i64: 1, 1, 8>}, {pipeline_mode = #tpu.pipeline_mode<synchronous>, transform_indices = @transform_2, window_bounds = array<i64: 32, 96>}, {pipeline_mode = #tpu.pipeline_mode<synchronous>, transform_indices = @transform_3, window_bounds = array<i64: 32, 32>}, {pipeline_mode = #tpu.pipeline_mode<synchronous>, transform_indices = @transform_4, window_bounds = array<i64: 1, 32>}, {pipeline_mode = #tpu.pipeline_mode<synchronous>, transform_indices = @transform_5, window_bounds = array<i64: 1, 32>}, {pipeline_mode = #tpu.pipeline_mode<synchronous>, transform_indices = @transform_6, window_bounds = array<i64: 1, 32>}, {pipeline_mode = #tpu.pipeline_mode<synchronous>, transform_indices = @transform_7, window_bounds = array<i64: 32, 64>}, {pipeline_mode = #tpu.pipeline_mode<synchronous>, transform_indices = @transform_8, window_bounds = array<i64: 1, 64>}, {pipeline_mode = #tpu.pipeline_mode<synchronous>, transform_indices = @transform_9, window_bounds = array<i64: 64, 32>}, {pipeline_mode = #tpu.pipeline_mode<synchronous>, transform_indices = @transform_10, window_bounds = array<i64: 1, 32>}, {pipeline_mode = #tpu.pipeline_mode<synchronous>, transform_indices = @transform_11, window_bounds = array<i64: 1, 32>}, {pipeline_mode = #tpu.pipeline_mode<synchronous>, transform_indices = @transform_12, window_bounds = array<i64: 1, 32>}, {transform_indices = @transform_13, window_bounds = array<i64: 1, 8, 32>}]} {
    %c0 = arith.constant 0 : index
    %c0_0 = arith.constant 0 : index
    %c0_1 = arith.constant 0 : index
    %0 = vector.load %arg1[%c0, %c0_0, %c0_1] : memref<1x8x32xf32, #tpu.memory_space<vmem>>, vector<1x8x32xf32>
    %1 = vector.shape_cast %0 : vector<1x8x32xf32> to vector<8x32xf32>
    %c0_2 = arith.constant 0 : index
    %c0_3 = arith.constant 0 : index
    %c0_4 = arith.constant 0 : index
    %2 = vector.load %arg2[%c0_2, %c0_3, %c0_4] : memref<1x1x8xf32, #tpu.memory_space<vmem>>, vector<1x1x8xf32>
    %3 = vector.shape_cast %2 : vector<1x1x8xf32> to vector<1x8xf32>
    %4 = vector.shape_cast %3 : vector<1x8xf32> to vector<1x8xf32>
    %5 = vector.broadcast %4 : vector<1x8xf32> to vector<8x8xf32>
    %c0_5 = arith.constant 0 : index
    %c0_6 = arith.constant 0 : index
    %6 = vector.load %arg3[%c0_5, %c0_6] : memref<32x96xf32, #tpu.memory_space<vmem>>, vector<32x96xf32>
    %cst = arith.constant dense<0.000000e+00> : vector<8x96xf32>
    %7 = tpu.matmul %1, %6, %cst {dimension_numbers = #tpu.dot_dimension_numbers<[1], [0], [0], [1], [0, 0, 1, 1], [], []>} : vector<8x32xf32>, vector<32x96xf32>, vector<8x96xf32> -> vector<8x96xf32>
    %8 = vector.extract_strided_slice %7 {offsets = [0, 0], sizes = [8, 32], strides = [1, 1]} : vector<8x96xf32> to vector<8x32xf32>
    %9 = vector.extract_strided_slice %7 {offsets = [0, 32], sizes = [8, 32], strides = [1, 1]} : vector<8x96xf32> to vector<8x32xf32>
    %10 = vector.extract_strided_slice %7 {offsets = [0, 64], sizes = [8, 32], strides = [1, 1]} : vector<8x96xf32> to vector<8x32xf32>
    %11 = vector.extract_strided_slice %8 {offsets = [0, 0], sizes = [8, 8], strides = [1, 1]} : vector<8x32xf32> to vector<8x8xf32>
    %12 = vector.extract_strided_slice %9 {offsets = [0, 0], sizes = [8, 8], strides = [1, 1]} : vector<8x32xf32> to vector<8x8xf32>
    %13 = vector.extract_strided_slice %10 {offsets = [0, 0], sizes = [8, 8], strides = [1, 1]} : vector<8x32xf32> to vector<8x8xf32>
    %cst_7 = arith.constant dense<0.000000e+00> : vector<8x8xf32>
    %14 = tpu.matmul %11, %12, %cst_7 {dimension_numbers = #tpu.dot_dimension_numbers<[1], [1], [0], [0], [0, 0, 1, 0], [], []>} : vector<8x8xf32>, vector<8x8xf32>, vector<8x8xf32> -> vector<8x8xf32>
    %15 = arith.addf %14, %5 : vector<8x8xf32>
    %cst_8 = arith.constant dense<0xFF800000> : vector<8xf32>
    %16 = vector.multi_reduction <maximumf>, %15, %cst_8 [1] : vector<8x8xf32> to vector<8xf32>
    %17 = vector.shape_cast %16 : vector<8xf32> to vector<8x1xf32>
    %18 = vector.broadcast %17 : vector<8x1xf32> to vector<8x8xf32>
    %19 = arith.subf %15, %18 : vector<8x8xf32>
    %20 = math.exp %19 : vector<8x8xf32>
    %cst_9 = arith.constant dense<0.000000e+00> : vector<8xf32>
    %21 = vector.multi_reduction <add>, %20, %cst_9 [1] : vector<8x8xf32> to vector<8xf32>
    %22 = vector.shape_cast %21 : vector<8xf32> to vector<8x1xf32>
    %23 = tpu.reciprocal %22 {approx = true} : vector<8x1xf32> -> vector<8x1xf32>
    %24 = arith.mulf %22, %23 : vector<8x1xf32>
    %cst_10 = arith.constant 2.000000e+00 : f32
    %25 = vector.broadcast %cst_10 : f32 to vector<8x1xf32>
    %26 = arith.subf %25, %24 : vector<8x1xf32>
    %27 = arith.mulf %23, %26 : vector<8x1xf32>
    %cst_11 = arith.constant dense<0.000000e+00> : vector<8x8xf32>
    %28 = tpu.matmul %20, %13, %cst_11 {dimension_numbers = #tpu.dot_dimension_numbers<[1], [0], [0], [1], [0, 0, 1, 1], [], []>} : vector<8x8xf32>, vector<8x8xf32>, vector<8x8xf32> -> vector<8x8xf32>
    %29 = vector.broadcast %27 : vector<8x1xf32> to vector<8x8xf32>
    %30 = arith.mulf %28, %29 : vector<8x8xf32>
    %c0_12 = arith.constant 0 : index
    %c0_13 = arith.constant 0 : index
    %31 = vector.load %arg15[%c0_12, %c0_13] : memref<8x32xf32, #tpu.memory_space<vmem>>, vector<8x8xf32>
    tpu.vector_store %arg15[%c0_12, %c0_13], %30 {strides = array<i32>} : memref<8x32xf32, #tpu.memory_space<vmem>>, vector<8x8xf32>,
    %32 = vector.extract_strided_slice %8 {offsets = [0, 8], sizes = [8, 8], strides = [1, 1]} : vector<8x32xf32> to vector<8x8xf32>
    %33 = vector.extract_strided_slice %9 {offsets = [0, 8], sizes = [8, 8], strides = [1, 1]} : vector<8x32xf32> to vector<8x8xf32>
    %34 = vector.extract_strided_slice %10 {offsets = [0, 8], sizes = [8, 8], strides = [1, 1]} : vector<8x32xf32> to vector<8x8xf32>
    %cst_14 = arith.constant dense<0.000000e+00> : vector<8x8xf32>
    %35 = tpu.matmul %32, %33, %cst_14 {dimension_numbers = #tpu.dot_dimension_numbers<[1], [1], [0], [0], [0, 0, 1, 0], [], []>} : vector<8x8xf32>, vector<8x8xf32>, vector<8x8xf32> -> vector<8x8xf32>
    %36 = arith.addf %35, %5 : vector<8x8xf32>
    %cst_15 = arith.constant dense<0xFF800000> : vector<8xf32>
    %37 = vector.multi_reduction <maximumf>, %36, %cst_15 [1] : vector<8x8xf32> to vector<8xf32>
    %38 = vector.shape_cast %37 : vector<8xf32> to vector<8x1xf32>
    %39 = vector.broadcast %38 : vector<8x1xf32> to vector<8x8xf32>
    %40 = arith.subf %36, %39 : vector<8x8xf32>
    %41 = math.exp %40 : vector<8x8xf32>
    %cst_16 = arith.constant dense<0.000000e+00> : vector<8xf32>
    %42 = vector.multi_reduction <add>, %41, %cst_16 [1] : vector<8x8xf32> to vector<8xf32>
    %43 = vector.shape_cast %42 : vector<8xf32> to vector<8x1xf32>
    %44 = tpu.reciprocal %43 {approx = true} : vector<8x1xf32> -> vector<8x1xf32>
    %45 = arith.mulf %43, %44 : vector<8x1xf32>
    %cst_17 = arith.constant 2.000000e+00 : f32
    %46 = vector.broadcast %cst_17 : f32 to vector<8x1xf32>
    %47 = arith.subf %46, %45 : vector<8x1xf32>
    %48 = arith.mulf %44, %47 : vector<8x1xf32>
    %cst_18 = arith.constant dense<0.000000e+00> : vector<8x8xf32>
    %49 = tpu.matmul %41, %34, %cst_18 {dimension_numbers = #tpu.dot_dimension_numbers<[1], [0], [0], [1], [0, 0, 1, 1], [], []>} : vector<8x8xf32>, vector<8x8xf32>, vector<8x8xf32> -> vector<8x8xf32>
    %50 = vector.broadcast %48 : vector<8x1xf32> to vector<8x8xf32>
    %51 = arith.mulf %49, %50 : vector<8x8xf32>
    %c0_19 = arith.constant 0 : index
    %c8 = arith.constant 8 : index
    %52 = vector.load %arg15[%c0_19, %c8] : memref<8x32xf32, #tpu.memory_space<vmem>>, vector<8x8xf32>
    tpu.vector_store %arg15[%c0_19, %c8], %51 {strides = array<i32>} : memref<8x32xf32, #tpu.memory_space<vmem>>, vector<8x8xf32>,
    %53 = vector.extract_strided_slice %8 {offsets = [0, 16], sizes = [8, 8], strides = [1, 1]} : vector<8x32xf32> to vector<8x8xf32>
    %54 = vector.extract_strided_slice %9 {offsets = [0, 16], sizes = [8, 8], strides = [1, 1]} : vector<8x32xf32> to vector<8x8xf32>
    %55 = vector.extract_strided_slice %10 {offsets = [0, 16], sizes = [8, 8], strides = [1, 1]} : vector<8x32xf32> to vector<8x8xf32>
    %cst_20 = arith.constant dense<0.000000e+00> : vector<8x8xf32>
    %56 = tpu.matmul %53, %54, %cst_20 {dimension_numbers = #tpu.dot_dimension_numbers<[1], [1], [0], [0], [0, 0, 1, 0], [], []>} : vector<8x8xf32>, vector<8x8xf32>, vector<8x8xf32> -> vector<8x8xf32>
    %57 = arith.addf %56, %5 : vector<8x8xf32>
    %cst_21 = arith.constant dense<0xFF800000> : vector<8xf32>
    %58 = vector.multi_reduction <maximumf>, %57, %cst_21 [1] : vector<8x8xf32> to vector<8xf32>
    %59 = vector.shape_cast %58 : vector<8xf32> to vector<8x1xf32>
    %60 = vector.broadcast %59 : vector<8x1xf32> to vector<8x8xf32>
    %61 = arith.subf %57, %60 : vector<8x8xf32>
    %62 = math.exp %61 : vector<8x8xf32>
    %cst_22 = arith.constant dense<0.000000e+00> : vector<8xf32>
    %63 = vector.multi_reduction <add>, %62, %cst_22 [1] : vector<8x8xf32> to vector<8xf32>
    %64 = vector.shape_cast %63 : vector<8xf32> to vector<8x1xf32>
    %65 = tpu.reciprocal %64 {approx = true} : vector<8x1xf32> -> vector<8x1xf32>
    %66 = arith.mulf %64, %65 : vector<8x1xf32>
    %cst_23 = arith.constant 2.000000e+00 : f32
    %67 = vector.broadcast %cst_23 : f32 to vector<8x1xf32>
    %68 = arith.subf %67, %66 : vector<8x1xf32>
    %69 = arith.mulf %65, %68 : vector<8x1xf32>
    %cst_24 = arith.constant dense<0.000000e+00> : vector<8x8xf32>
    %70 = tpu.matmul %62, %55, %cst_24 {dimension_numbers = #tpu.dot_dimension_numbers<[1], [0], [0], [1], [0, 0, 1, 1], [], []>} : vector<8x8xf32>, vector<8x8xf32>, vector<8x8xf32> -> vector<8x8xf32>
    %71 = vector.broadcast %69 : vector<8x1xf32> to vector<8x8xf32>
    %72 = arith.mulf %70, %71 : vector<8x8xf32>
    %c0_25 = arith.constant 0 : index
    %c16 = arith.constant 16 : index
    %73 = vector.load %arg15[%c0_25, %c16] : memref<8x32xf32, #tpu.memory_space<vmem>>, vector<8x8xf32>
    tpu.vector_store %arg15[%c0_25, %c16], %72 {strides = array<i32>} : memref<8x32xf32, #tpu.memory_space<vmem>>, vector<8x8xf32>,
    %74 = vector.extract_strided_slice %8 {offsets = [0, 24], sizes = [8, 8], strides = [1, 1]} : vector<8x32xf32> to vector<8x8xf32>
    %75 = vector.extract_strided_slice %9 {offsets = [0, 24], sizes = [8, 8], strides = [1, 1]} : vector<8x32xf32> to vector<8x8xf32>
    %76 = vector.extract_strided_slice %10 {offsets = [0, 24], sizes = [8, 8], strides = [1, 1]} : vector<8x32xf32> to vector<8x8xf32>
    %cst_26 = arith.constant dense<0.000000e+00> : vector<8x8xf32>
    %77 = tpu.matmul %74, %75, %cst_26 {dimension_numbers = #tpu.dot_dimension_numbers<[1], [1], [0], [0], [0, 0, 1, 0], [], []>} : vector<8x8xf32>, vector<8x8xf32>, vector<8x8xf32> -> vector<8x8xf32>
    %78 = arith.addf %77, %5 : vector<8x8xf32>
    %cst_27 = arith.constant dense<0xFF800000> : vector<8xf32>
    %79 = vector.multi_reduction <maximumf>, %78, %cst_27 [1] : vector<8x8xf32> to vector<8xf32>
    %80 = vector.shape_cast %79 : vector<8xf32> to vector<8x1xf32>
    %81 = vector.broadcast %80 : vector<8x1xf32> to vector<8x8xf32>
    %82 = arith.subf %78, %81 : vector<8x8xf32>
    %83 = math.exp %82 : vector<8x8xf32>
    %cst_28 = arith.constant dense<0.000000e+00> : vector<8xf32>
    %84 = vector.multi_reduction <add>, %83, %cst_28 [1] : vector<8x8xf32> to vector<8xf32>
    %85 = vector.shape_cast %84 : vector<8xf32> to vector<8x1xf32>
    %86 = tpu.reciprocal %85 {approx = true} : vector<8x1xf32> -> vector<8x1xf32>
    %87 = arith.mulf %85, %86 : vector<8x1xf32>
    %cst_29 = arith.constant 2.000000e+00 : f32
    %88 = vector.broadcast %cst_29 : f32 to vector<8x1xf32>
    %89 = arith.subf %88, %87 : vector<8x1xf32>
    %90 = arith.mulf %86, %89 : vector<8x1xf32>
    %cst_30 = arith.constant dense<0.000000e+00> : vector<8x8xf32>
    %91 = tpu.matmul %83, %76, %cst_30 {dimension_numbers = #tpu.dot_dimension_numbers<[1], [0], [0], [1], [0, 0, 1, 1], [], []>} : vector<8x8xf32>, vector<8x8xf32>, vector<8x8xf32> -> vector<8x8xf32>
    %92 = vector.broadcast %90 : vector<8x1xf32> to vector<8x8xf32>
    %93 = arith.mulf %91, %92 : vector<8x8xf32>
    %c0_31 = arith.constant 0 : index
    %c24 = arith.constant 24 : index
    %94 = vector.load %arg15[%c0_31, %c24] : memref<8x32xf32, #tpu.memory_space<vmem>>, vector<8x8xf32>
    tpu.vector_store %arg15[%c0_31, %c24], %93 {strides = array<i32>} : memref<8x32xf32, #tpu.memory_space<vmem>>, vector<8x8xf32>,
    %c0_32 = arith.constant 0 : index
    %c0_33 = arith.constant 0 : index
    %95 = vector.load %arg15[%c0_32, %c0_33] : memref<8x32xf32, #tpu.memory_space<vmem>>, vector<8x32xf32>
    %c0_34 = arith.constant 0 : index
    %c0_35 = arith.constant 0 : index
    %96 = vector.load %arg4[%c0_34, %c0_35] : memref<32x32xf32, #tpu.memory_space<vmem>>, vector<32x32xf32>
    %cst_36 = arith.constant dense<0.000000e+00> : vector<8x32xf32>
    %97 = tpu.matmul %95, %96, %cst_36 {dimension_numbers = #tpu.dot_dimension_numbers<[1], [0], [0], [1], [0, 0, 1, 1], [], []>} : vector<8x32xf32>, vector<32x32xf32>, vector<8x32xf32> -> vector<8x32xf32>
    %c0_37 = arith.constant 0 : index
    %c0_38 = arith.constant 0 : index
    %98 = vector.load %arg5[%c0_37, %c0_38] : memref<1x32xf32, #tpu.memory_space<vmem>>, vector<1x32xf32>
    %99 = vector.broadcast %98 : vector<1x32xf32> to vector<8x32xf32>
    %100 = arith.addf %97, %99 : vector<8x32xf32>
    %101 = arith.addf %100, %1 : vector<8x32xf32>
    %c0_39 = arith.constant 0 : index
    %c0_40 = arith.constant 0 : index
    %102 = vector.load %arg6[%c0_39, %c0_40] : memref<1x32xf32, #tpu.memory_space<vmem>>, vector<1x32xf32>
    %c0_41 = arith.constant 0 : index
    %c0_42 = arith.constant 0 : index
    %103 = vector.load %arg7[%c0_41, %c0_42] : memref<1x32xf32, #tpu.memory_space<vmem>>, vector<1x32xf32>
    %cst_43 = arith.constant dense<0.000000e+00> : vector<8xf32>
    %104 = vector.multi_reduction <add>, %101, %cst_43 [1] : vector<8x32xf32> to vector<8xf32>
    %105 = vector.shape_cast %104 : vector<8xf32> to vector<8x1xf32>
    %cst_44 = arith.constant 3.200000e+01 : f32
    %106 = vector.broadcast %cst_44 : f32 to vector<8x1xf32>
    %107 = arith.divf %105, %106 : vector<8x1xf32>
    %108 = vector.broadcast %107 : vector<8x1xf32> to vector<8x32xf32>
    %109 = arith.subf %101, %108 : vector<8x32xf32>
    %110 = arith.mulf %109, %109 : vector<8x32xf32>
    %cst_45 = arith.constant dense<0.000000e+00> : vector<8xf32>
    %111 = vector.multi_reduction <add>, %110, %cst_45 [1] : vector<8x32xf32> to vector<8xf32>
    %112 = vector.shape_cast %111 : vector<8xf32> to vector<8x1xf32>
    %cst_46 = arith.constant 3.200000e+01 : f32
    %113 = vector.broadcast %cst_46 : f32 to vector<8x1xf32>
    %114 = arith.divf %112, %113 : vector<8x1xf32>
    %cst_47 = arith.constant 9.99999996E-13 : f32
    %115 = vector.broadcast %cst_47 : f32 to vector<8x1xf32>
    %116 = arith.addf %114, %115 : vector<8x1xf32>
    %117 = math.rsqrt %116 : vector<8x1xf32>
    %118 = vector.broadcast %117 : vector<8x1xf32> to vector<8x32xf32>
    %119 = arith.mulf %109, %118 : vector<8x32xf32>
    %120 = vector.broadcast %102 : vector<1x32xf32> to vector<8x32xf32>
    %121 = arith.mulf %119, %120 : vector<8x32xf32>
    %122 = vector.broadcast %103 : vector<1x32xf32> to vector<8x32xf32>
    %123 = arith.addf %121, %122 : vector<8x32xf32>
    %c0_48 = arith.constant 0 : index
    %c0_49 = arith.constant 0 : index
    %124 = vector.load %arg8[%c0_48, %c0_49] : memref<32x64xf32, #tpu.memory_space<vmem>>, vector<32x64xf32>
    %cst_50 = arith.constant dense<0.000000e+00> : vector<8x64xf32>
    %125 = tpu.matmul %123, %124, %cst_50 {dimension_numbers = #tpu.dot_dimension_numbers<[1], [0], [0], [1], [0, 0, 1, 1], [], []>} : vector<8x32xf32>, vector<32x64xf32>, vector<8x64xf32> -> vector<8x64xf32>
    %c0_51 = arith.constant 0 : index
    %c0_52 = arith.constant 0 : index
    %126 = vector.load %arg9[%c0_51, %c0_52] : memref<1x64xf32, #tpu.memory_space<vmem>>, vector<1x64xf32>
    %127 = vector.broadcast %126 : vector<1x64xf32> to vector<8x64xf32>
    %128 = arith.addf %125, %127 : vector<8x64xf32>
    %cst_53 = arith.constant 5.000000e-01 : f32
    %129 = vector.broadcast %cst_53 : f32 to vector<8x64xf32>
    %130 = arith.mulf %129, %128 : vector<8x64xf32>
    %cst_54 = arith.constant 0.707106769 : f32
    %131 = vector.broadcast %cst_54 : f32 to vector<8x64xf32>
    %132 = arith.mulf %128, %131 : vector<8x64xf32>
    %cst_55 = arith.constant 0.000000e+00 : f32
    %133 = vector.broadcast %cst_55 : f32 to vector<8x64xf32>
    %134 = arith.cmpf oge, %132, %133 : vector<8x64xf32>
    %cst_56 = arith.constant 1.000000e+00 : f32
    %cst_57 = arith.constant -1.000000e+00 : f32
    %135 = vector.broadcast %cst_56 : f32 to vector<8x64xf32>
    %136 = vector.broadcast %cst_57 : f32 to vector<8x64xf32>
    %137 = arith.select %134, %135, %136 : vector<8x64xi1>, vector<8x64xf32>
    %138 = math.absf %132 : vector<8x64xf32>
    %cst_58 = arith.constant 0.327591091 : f32
    %139 = vector.broadcast %cst_58 : f32 to vector<8x64xf32>
    %140 = arith.mulf %139, %138 : vector<8x64xf32>
    %cst_59 = arith.constant 1.000000e+00 : f32
    %141 = vector.broadcast %cst_59 : f32 to vector<8x64xf32>
    %142 = arith.addf %141, %140 : vector<8x64xf32>
    %cst_60 = arith.constant 1.000000e+00 : f32
    %143 = vector.broadcast %cst_60 : f32 to vector<8x64xf32>
    %144 = arith.divf %143, %142 : vector<8x64xf32>
    %cst_61 = arith.constant 1.06140542 : f32
    %145 = vector.broadcast %cst_61 : f32 to vector<8x64xf32>
    %146 = arith.mulf %145, %144 : vector<8x64xf32>
    %cst_62 = arith.constant -1.45315206 : f32
    %147 = vector.broadcast %cst_62 : f32 to vector<8x64xf32>
    %148 = arith.addf %146, %147 : vector<8x64xf32>
    %149 = arith.mulf %148, %144 : vector<8x64xf32>
    %cst_63 = arith.constant 1.42141378 : f32
    %150 = vector.broadcast %cst_63 : f32 to vector<8x64xf32>
    %151 = arith.addf %149, %150 : vector<8x64xf32>
    %152 = arith.mulf %151, %144 : vector<8x64xf32>
    %cst_64 = arith.constant -0.284496725 : f32
    %153 = vector.broadcast %cst_64 : f32 to vector<8x64xf32>
    %154 = arith.addf %152, %153 : vector<8x64xf32>
    %155 = arith.mulf %154, %144 : vector<8x64xf32>
    %cst_65 = arith.constant 0.254829586 : f32
    %156 = vector.broadcast %cst_65 : f32 to vector<8x64xf32>
    %157 = arith.addf %155, %156 : vector<8x64xf32>
    %158 = arith.mulf %157, %144 : vector<8x64xf32>
    %cst_66 = arith.constant 0.000000e+00 : f32
    %159 = vector.broadcast %cst_66 : f32 to vector<8x64xf32>
    %160 = arith.subf %159, %138 : vector<8x64xf32>
    %161 = arith.mulf %160, %138 : vector<8x64xf32>
    %162 = math.exp %161 : vector<8x64xf32>
    %163 = arith.mulf %158, %162 : vector<8x64xf32>
    %cst_67 = arith.constant 1.000000e+00 : f32
    %164 = vector.broadcast %cst_67 : f32 to vector<8x64xf32>
    %165 = arith.subf %164, %163 : vector<8x64xf32>
    %166 = arith.mulf %137, %165 : vector<8x64xf32>
    %cst_68 = arith.constant 1.000000e+00 : f32
    %167 = vector.broadcast %cst_68 : f32 to vector<8x64xf32>
    %168 = arith.addf %167, %166 : vector<8x64xf32>
    %169 = arith.mulf %130, %168 : vector<8x64xf32>
    %c0_69 = arith.constant 0 : index
    %c0_70 = arith.constant 0 : index
    %170 = vector.load %arg10[%c0_69, %c0_70] : memref<64x32xf32, #tpu.memory_space<vmem>>, vector<64x32xf32>
    %cst_71 = arith.constant dense<0.000000e+00> : vector<8x32xf32>
    %171 = tpu.matmul %169, %170, %cst_71 {dimension_numbers = #tpu.dot_dimension_numbers<[1], [0], [0], [1], [0, 0, 1, 1], [], []>} : vector<8x64xf32>, vector<64x32xf32>, vector<8x32xf32> -> vector<8x32xf32>
    %c0_72 = arith.constant 0 : index
    %c0_73 = arith.constant 0 : index
    %172 = vector.load %arg11[%c0_72, %c0_73] : memref<1x32xf32, #tpu.memory_space<vmem>>, vector<1x32xf32>
    %173 = vector.broadcast %172 : vector<1x32xf32> to vector<8x32xf32>
    %174 = arith.addf %171, %173 : vector<8x32xf32>
    %175 = arith.addf %123, %174 : vector<8x32xf32>
    %c0_74 = arith.constant 0 : index
    %c0_75 = arith.constant 0 : index
    %176 = vector.load %arg12[%c0_74, %c0_75] : memref<1x32xf32, #tpu.memory_space<vmem>>, vector<1x32xf32>
    %c0_76 = arith.constant 0 : index
    %c0_77 = arith.constant 0 : index
    %177 = vector.load %arg13[%c0_76, %c0_77] : memref<1x32xf32, #tpu.memory_space<vmem>>, vector<1x32xf32>
    %cst_78 = arith.constant dense<0.000000e+00> : vector<8xf32>
    %178 = vector.multi_reduction <add>, %175, %cst_78 [1] : vector<8x32xf32> to vector<8xf32>
    %179 = vector.shape_cast %178 : vector<8xf32> to vector<8x1xf32>
    %cst_79 = arith.constant 3.200000e+01 : f32
    %180 = vector.broadcast %cst_79 : f32 to vector<8x1xf32>
    %181 = arith.divf %179, %180 : vector<8x1xf32>
    %182 = vector.broadcast %181 : vector<8x1xf32> to vector<8x32xf32>
    %183 = arith.subf %175, %182 : vector<8x32xf32>
    %184 = arith.mulf %183, %183 : vector<8x32xf32>
    %cst_80 = arith.constant dense<0.000000e+00> : vector<8xf32>
    %185 = vector.multi_reduction <add>, %184, %cst_80 [1] : vector<8x32xf32> to vector<8xf32>
    %186 = vector.shape_cast %185 : vector<8xf32> to vector<8x1xf32>
    %cst_81 = arith.constant 3.200000e+01 : f32
    %187 = vector.broadcast %cst_81 : f32 to vector<8x1xf32>
    %188 = arith.divf %186, %187 : vector<8x1xf32>
    %cst_82 = arith.constant 9.99999996E-13 : f32
    %189 = vector.broadcast %cst_82 : f32 to vector<8x1xf32>
    %190 = arith.addf %188, %189 : vector<8x1xf32>
    %191 = math.rsqrt %190 : vector<8x1xf32>
    %192 = vector.broadcast %191 : vector<8x1xf32> to vector<8x32xf32>
    %193 = arith.mulf %183, %192 : vector<8x32xf32>
    %194 = vector.broadcast %176 : vector<1x32xf32> to vector<8x32xf32>
    %195 = arith.mulf %193, %194 : vector<8x32xf32>
    %196 = vector.broadcast %177 : vector<1x32xf32> to vector<8x32xf32>
    %197 = arith.addf %195, %196 : vector<8x32xf32>
    %c0_83 = arith.constant 0 : index
    %c0_84 = arith.constant 0 : index
    %c0_85 = arith.constant 0 : index
    %198 = vector.load %arg14[%c0_83, %c0_84, %c0_85] : memref<1x8x32xf32, #tpu.memory_space<vmem>>, vector<1x8x32xf32>
    %199 = vector.shape_cast %198 : vector<1x8x32xf32> to vector<8x32xf32>
    %200 = vector.shape_cast %197 : vector<8x32xf32> to vector<1x8x32xf32>
    tpu.vector_store %arg14[%c0_83, %c0_84, %c0_85], %200 {strides = array<i32>} : memref<1x8x32xf32, #tpu.memory_space<vmem>>, vector<1x8x32xf32>,
    return
  }
  func.func @transform_0(%arg0: i32) -> (i32, i32, i32) {
    %c0_i32 = arith.constant 0 : i32
    %c0_i32_0 = arith.constant 0 : i32
    %c0_i32_1 = arith.constant 0 : i32
    return %arg0, %c0_i32, %c0_i32_0 : i32, i32, i32
  }
  func.func @transform_1(%arg0: i32) -> (i32, i32, i32) {
    %c0_i32 = arith.constant 0 : i32
    %c0_i32_0 = arith.constant 0 : i32
    %c0_i32_1 = arith.constant 0 : i32
    return %arg0, %c0_i32, %c0_i32_0 : i32, i32, i32
  }
  func.func @transform_2(%arg0: i32) -> (i32, i32) {
    %c0_i32 = arith.constant 0 : i32
    %c0_i32_0 = arith.constant 0 : i32
    %c0_i32_1 = arith.constant 0 : i32
    return %c0_i32, %c0_i32_0 : i32, i32
  }
  func.func @transform_3(%arg0: i32) -> (i32, i32) {
    %c0_i32 = arith.constant 0 : i32
    %c0_i32_0 = arith.constant 0 : i32
    %c0_i32_1 = arith.constant 0 : i32
    return %c0_i32, %c0_i32_0 : i32, i32
  }
  func.func @transform_4(%arg0: i32) -> (i32, i32) {
    %c0_i32 = arith.constant 0 : i32
    %c0_i32_0 = arith.constant 0 : i32
    %c0_i32_1 = arith.constant 0 : i32
    return %c0_i32, %c0_i32_0 : i32, i32
  }
  func.func @transform_5(%arg0: i32) -> (i32, i32) {
    %c0_i32 = arith.constant 0 : i32
    %c0_i32_0 = arith.constant 0 : i32
    %c0_i32_1 = arith.constant 0 : i32
    return %c0_i32, %c0_i32_0 : i32, i32
  }
  func.func @transform_6(%arg0: i32) -> (i32, i32) {
    %c0_i32 = arith.constant 0 : i32
    %c0_i32_0 = arith.constant 0 : i32
    %c0_i32_1 = arith.constant 0 : i32
    return %c0_i32, %c0_i32_0 : i32, i32
  }
  func.func @transform_7(%arg0: i32) -> (i32, i32) {
    %c0_i32 = arith.constant 0 : i32
    %c0_i32_0 = arith.constant 0 : i32
    %c0_i32_1 = arith.constant 0 : i32
    return %c0_i32, %c0_i32_0 : i32, i32
  }
  func.func @transform_8(%arg0: i32) -> (i32, i32) {
    %c0_i32 = arith.constant 0 : i32
    %c0_i32_0 = arith.constant 0 : i32
    %c0_i32_1 = arith.constant 0 : i32
    return %c0_i32, %c0_i32_0 : i32, i32
  }
  func.func @transform_9(%arg0: i32) -> (i32, i32) {
    %c0_i32 = arith.constant 0 : i32
    %c0_i32_0 = arith.constant 0 : i32
    %c0_i32_1 = arith.constant 0 : i32
    return %c0_i32, %c0_i32_0 : i32, i32
  }
  func.func @transform_10(%arg0: i32) -> (i32, i32) {
    %c0_i32 = arith.constant 0 : i32
    %c0_i32_0 = arith.constant 0 : i32
    %c0_i32_1 = arith.constant 0 : i32
    return %c0_i32, %c0_i32_0 : i32, i32
  }
  func.func @transform_11(%arg0: i32) -> (i32, i32) {
    %c0_i32 = arith.constant 0 : i32
    %c0_i32_0 = arith.constant 0 : i32
    %c0_i32_1 = arith.constant 0 : i32
    return %c0_i32, %c0_i32_0 : i32, i32
  }
  func.func @transform_12(%arg0: i32) -> (i32, i32) {
    %c0_i32 = arith.constant 0 : i32
    %c0_i32_0 = arith.constant 0 : i32
    %c0_i32_1 = arith.constant 0 : i32
    return %c0_i32, %c0_i32_0 : i32, i32
  }
  func.func @transform_13(%arg0: i32) -> (i32, i32, i32) {
    %c0_i32 = arith.constant 0 : i32
    %c0_i32_0 = arith.constant 0 : i32
    %c0_i32_1 = arith.constant 0 : i32
    return %arg0, %c0_i32, %c0_i32_0 : i32, i32, i32
  }
}

module attributes {stable_mosaic.version = 11 : i64} {
  func.func @_transformer_layer_kernel(%arg0: i32, %arg1: memref<1x8x32xf32, #tpu.memory_space<vmem>>, %arg2: memref<1x1x8xf32, #tpu.memory_space<vmem>>, %arg3: memref<32x96xf32, #tpu.memory_space<vmem>>, %arg4: memref<32x32xf32, #tpu.memory_space<vmem>>, %arg5: memref<1x32xf32, #tpu.memory_space<vmem>>, %arg6: memref<1x32xf32, #tpu.memory_space<vmem>>, %arg7: memref<1x32xf32, #tpu.memory_space<vmem>>, %arg8: memref<32x64xf32, #tpu.memory_space<vmem>>, %arg9: memref<1x64xf32, #tpu.memory_space<vmem>>, %arg10: memref<64x32xf32, #tpu.memory_space<vmem>>, %arg11: memref<1x32xf32, #tpu.memory_space<vmem>>, %arg12: memref<1x32xf32, #tpu.memory_space<vmem>>, %arg13: memref<1x32xf32, #tpu.memory_space<vmem>>, %arg14: memref<1x8x32xf32, #tpu.memory_space<vmem>>, %arg15: memref<8x32xf32, #tpu.memory_space<vmem>>) attributes {dimension_semantics = [#tpu.dimension_semantics<parallel>], iteration_bounds = array<i64: 2>, scalar_prefetch = 0 : i64, scratch_operands = 1 : i64, tpu.core_type = #tpu.core_type<tc>, window_params = [{transform_indices = @transform_0, window_bounds = array<i64: 1, 8, 32>}, {transform_indices = @transform_1, window_bounds = array<i64: 1, 1, 8>}, {pipeline_mode = #tpu.pipeline_mode<synchronous>, transform_indices = @transform_2, window_bounds = array<i64: 32, 96>}, {pipeline_mode = #tpu.pipeline_mode<synchronous>, transform_indices = @transform_3, window_bounds = array<i64: 32, 32>}, {pipeline_mode = #tpu.pipeline_mode<synchronous>, transform_indices = @transform_4, window_bounds = array<i64: 1, 32>}, {pipeline_mode = #tpu.pipeline_mode<synchronous>, transform_indices = @transform_5, window_bounds = array<i64: 1, 32>}, {pipeline_mode = #tpu.pipeline_mode<synchronous>, transform_indices = @transform_6, window_bounds = array<i64: 1, 32>}, {pipeline_mode = #tpu.pipeline_mode<synchronous>, transform_indices = @transform_7, window_bounds = array<i64: 32, 64>}, {pipeline_mode = #tpu.pipeline_mode<synchronous>, transform_indices = @transform_8, window_bounds = array<i64: 1, 64>}, {pipeline_mode = #tpu.pipeline_mode<synchronous>, transform_indices = @transform_9, window_bounds = array<i64: 64, 32>}, {pipeline_mode = #tpu.pipeline_mode<synchronous>, transform_indices = @transform_10, window_bounds = array<i64: 1, 32>}, {pipeline_mode = #tpu.pipeline_mode<synchronous>, transform_indices = @transform_11, window_bounds = array<i64: 1, 32>}, {pipeline_mode = #tpu.pipeline_mode<synchronous>, transform_indices = @transform_12, window_bounds = array<i64: 1, 32>}, {transform_indices = @transform_13, window_bounds = array<i64: 1, 8, 32>}]} {
    %c0 = arith.constant 0 : index
    %c0_0 = arith.constant 0 : index
    %c0_1 = arith.constant 0 : index
    %0 = vector.load %arg1[%c0, %c0_0, %c0_1] : memref<1x8x32xf32, #tpu.memory_space<vmem>>, vector<1x8x32xf32>
    %1 = vector.shape_cast %0 : vector<1x8x32xf32> to vector<8x32xf32>
    %c0_2 = arith.constant 0 : index
    %c0_3 = arith.constant 0 : index
    %c0_4 = arith.constant 0 : index
    %2 = vector.load %arg2[%c0_2, %c0_3, %c0_4] : memref<1x1x8xf32, #tpu.memory_space<vmem>>, vector<1x1x8xf32>
    %3 = vector.shape_cast %2 : vector<1x1x8xf32> to vector<1x8xf32>
    %4 = vector.shape_cast %3 : vector<1x8xf32> to vector<1x8xf32>
    %5 = vector.broadcast %4 : vector<1x8xf32> to vector<8x8xf32>
    %c0_5 = arith.constant 0 : index
    %c0_6 = arith.constant 0 : index
    %6 = vector.load %arg3[%c0_5, %c0_6] : memref<32x96xf32, #tpu.memory_space<vmem>>, vector<32x96xf32>
    %cst = arith.constant dense<0.000000e+00> : vector<8x96xf32>
    %7 = tpu.matmul %1, %6, %cst {dimension_numbers = #tpu.dot_dimension_numbers<[1], [0], [0], [1], [0, 0, 1, 1], [], []>} : vector<8x32xf32>, vector<32x96xf32>, vector<8x96xf32> -> vector<8x96xf32>
    %8 = vector.extract_strided_slice %7 {offsets = [0, 0], sizes = [8, 32], strides = [1, 1]} : vector<8x96xf32> to vector<8x32xf32>
    %9 = vector.extract_strided_slice %7 {offsets = [0, 32], sizes = [8, 32], strides = [1, 1]} : vector<8x96xf32> to vector<8x32xf32>
    %10 = vector.extract_strided_slice %7 {offsets = [0, 64], sizes = [8, 32], strides = [1, 1]} : vector<8x96xf32> to vector<8x32xf32>
    %11 = vector.extract_strided_slice %8 {offsets = [0, 0], sizes = [8, 8], strides = [1, 1]} : vector<8x32xf32> to vector<8x8xf32>
    %12 = vector.extract_strided_slice %9 {offsets = [0, 0], sizes = [8, 8], strides = [1, 1]} : vector<8x32xf32> to vector<8x8xf32>
    %13 = vector.extract_strided_slice %10 {offsets = [0, 0], sizes = [8, 8], strides = [1, 1]} : vector<8x32xf32> to vector<8x8xf32>
    %cst_7 = arith.constant dense<0.000000e+00> : vector<8x8xf32>
    %14 = tpu.matmul %11, %12, %cst_7 {dimension_numbers = #tpu.dot_dimension_numbers<[1], [1], [0], [0], [0, 0, 1, 0], [], []>} : vector<8x8xf32>, vector<8x8xf32>, vector<8x8xf32> -> vector<8x8xf32>
    %15 = arith.addf %14, %5 : vector<8x8xf32>
    %cst_8 = arith.constant dense<0xFF800000> : vector<8xf32>
    %16 = vector.multi_reduction <maximumf>, %15, %cst_8 [1] : vector<8x8xf32> to vector<8xf32>
    %17 = vector.shape_cast %16 : vector<8xf32> to vector<8x1xf32>
    %18 = vector.broadcast %17 : vector<8x1xf32> to vector<8x8xf32>
    %19 = arith.subf %15, %18 : vector<8x8xf32>
    %20 = math.exp %19 : vector<8x8xf32>
    %cst_9 = arith.constant dense<0.000000e+00> : vector<8xf32>
    %21 = vector.multi_reduction <add>, %20, %cst_9 [1] : vector<8x8xf32> to vector<8xf32>
    %22 = vector.shape_cast %21 : vector<8xf32> to vector<8x1xf32>
    %23 = tpu.reciprocal %22 {approx = true} : vector<8x1xf32> -> vector<8x1xf32>
    %24 = arith.mulf %22, %23 : vector<8x1xf32>
    %cst_10 = arith.constant 2.000000e+00 : f32
    %25 = vector.broadcast %cst_10 : f32 to vector<8x1xf32>
    %26 = arith.subf %25, %24 : vector<8x1xf32>
    %27 = arith.mulf %23, %26 : vector<8x1xf32>
    %cst_11 = arith.constant dense<0.000000e+00> : vector<8x8xf32>
    %28 = tpu.matmul %20, %13, %cst_11 {dimension_numbers = #tpu.dot_dimension_numbers<[1], [0], [0], [1], [0, 0, 1, 1], [], []>} : vector<8x8xf32>, vector<8x8xf32>, vector<8x8xf32> -> vector<8x8xf32>
    %29 = vector.broadcast %27 : vector<8x1xf32> to vector<8x8xf32>
    %30 = arith.mulf %28, %29 : vector<8x8xf32>
    %c0_12 = arith.constant 0 : index
    %c0_13 = arith.constant 0 : index
    %31 = vector.load %arg15[%c0_12, %c0_13] : memref<8x32xf32, #tpu.memory_space<vmem>>, vector<8x8xf32>
    tpu.vector_store %arg15[%c0_12, %c0_13], %30 {strides = array<i32>} : memref<8x32xf32, #tpu.memory_space<vmem>>, vector<8x8xf32>,
    %32 = vector.extract_strided_slice %8 {offsets = [0, 8], sizes = [8, 8], strides = [1, 1]} : vector<8x32xf32> to vector<8x8xf32>
    %33 = vector.extract_strided_slice %9 {offsets = [0, 8], sizes = [8, 8], strides = [1, 1]} : vector<8x32xf32> to vector<8x8xf32>
    %34 = vector.extract_strided_slice %10 {offsets = [0, 8], sizes = [8, 8], strides = [1, 1]} : vector<8x32xf32> to vector<8x8xf32>
    %cst_14 = arith.constant dense<0.000000e+00> : vector<8x8xf32>
    %35 = tpu.matmul %32, %33, %cst_14 {dimension_numbers = #tpu.dot_dimension_numbers<[1], [1], [0], [0], [0, 0, 1, 0], [], []>} : vector<8x8xf32>, vector<8x8xf32>, vector<8x8xf32> -> vector<8x8xf32>
    %36 = arith.addf %35, %5 : vector<8x8xf32>
    %cst_15 = arith.constant dense<0xFF800000> : vector<8xf32>
    %37 = vector.multi_reduction <maximumf>, %36, %cst_15 [1] : vector<8x8xf32> to vector<8xf32>
    %38 = vector.shape_cast %37 : vector<8xf32> to vector<8x1xf32>
    %39 = vector.broadcast %38 : vector<8x1xf32> to vector<8x8xf32>
    %40 = arith.subf %36, %39 : vector<8x8xf32>
    %41 = math.exp %40 : vector<8x8xf32>
    %cst_16 = arith.constant dense<0.000000e+00> : vector<8xf32>
    %42 = vector.multi_reduction <add>, %41, %cst_16 [1] : vector<8x8xf32> to vector<8xf32>
    %43 = vector.shape_cast %42 : vector<8xf32> to vector<8x1xf32>
    %44 = tpu.reciprocal %43 {approx = true} : vector<8x1xf32> -> vector<8x1xf32>
    %45 = arith.mulf %43, %44 : vector<8x1xf32>
    %cst_17 = arith.constant 2.000000e+00 : f32
    %46 = vector.broadcast %cst_17 : f32 to vector<8x1xf32>
    %47 = arith.subf %46, %45 : vector<8x1xf32>
    %48 = arith.mulf %44, %47 : vector<8x1xf32>
    %cst_18 = arith.constant dense<0.000000e+00> : vector<8x8xf32>
    %49 = tpu.matmul %41, %34, %cst_18 {dimension_numbers = #tpu.dot_dimension_numbers<[1], [0], [0], [1], [0, 0, 1, 1], [], []>} : vector<8x8xf32>, vector<8x8xf32>, vector<8x8xf32> -> vector<8x8xf32>
    %50 = vector.broadcast %48 : vector<8x1xf32> to vector<8x8xf32>
    %51 = arith.mulf %49, %50 : vector<8x8xf32>
    %c0_19 = arith.constant 0 : index
    %c8 = arith.constant 8 : index
    %52 = vector.load %arg15[%c0_19, %c8] : memref<8x32xf32, #tpu.memory_space<vmem>>, vector<8x8xf32>
    tpu.vector_store %arg15[%c0_19, %c8], %51 {strides = array<i32>} : memref<8x32xf32, #tpu.memory_space<vmem>>, vector<8x8xf32>,
    %53 = vector.extract_strided_slice %8 {offsets = [0, 16], sizes = [8, 8], strides = [1, 1]} : vector<8x32xf32> to vector<8x8xf32>
    %54 = vector.extract_strided_slice %9 {offsets = [0, 16], sizes = [8, 8], strides = [1, 1]} : vector<8x32xf32> to vector<8x8xf32>
    %55 = vector.extract_strided_slice %10 {offsets = [0, 16], sizes = [8, 8], strides = [1, 1]} : vector<8x32xf32> to vector<8x8xf32>
    %cst_20 = arith.constant dense<0.000000e+00> : vector<8x8xf32>
    %56 = tpu.matmul %53, %54, %cst_20 {dimension_numbers = #tpu.dot_dimension_numbers<[1], [1], [0], [0], [0, 0, 1, 0], [], []>} : vector<8x8xf32>, vector<8x8xf32>, vector<8x8xf32> -> vector<8x8xf32>
    %57 = arith.addf %56, %5 : vector<8x8xf32>
    %cst_21 = arith.constant dense<0xFF800000> : vector<8xf32>
    %58 = vector.multi_reduction <maximumf>, %57, %cst_21 [1] : vector<8x8xf32> to vector<8xf32>
    %59 = vector.shape_cast %58 : vector<8xf32> to vector<8x1xf32>
    %60 = vector.broadcast %59 : vector<8x1xf32> to vector<8x8xf32>
    %61 = arith.subf %57, %60 : vector<8x8xf32>
    %62 = math.exp %61 : vector<8x8xf32>
    %cst_22 = arith.constant dense<0.000000e+00> : vector<8xf32>
    %63 = vector.multi_reduction <add>, %62, %cst_22 [1] : vector<8x8xf32> to vector<8xf32>
    %64 = vector.shape_cast %63 : vector<8xf32> to vector<8x1xf32>
    %65 = tpu.reciprocal %64 {approx = true} : vector<8x1xf32> -> vector<8x1xf32>
    %66 = arith.mulf %64, %65 : vector<8x1xf32>
    %cst_23 = arith.constant 2.000000e+00 : f32
    %67 = vector.broadcast %cst_23 : f32 to vector<8x1xf32>
    %68 = arith.subf %67, %66 : vector<8x1xf32>
    %69 = arith.mulf %65, %68 : vector<8x1xf32>
    %cst_24 = arith.constant dense<0.000000e+00> : vector<8x8xf32>
    %70 = tpu.matmul %62, %55, %cst_24 {dimension_numbers = #tpu.dot_dimension_numbers<[1], [0], [0], [1], [0, 0, 1, 1], [], []>} : vector<8x8xf32>, vector<8x8xf32>, vector<8x8xf32> -> vector<8x8xf32>
    %71 = vector.broadcast %69 : vector<8x1xf32> to vector<8x8xf32>
    %72 = arith.mulf %70, %71 : vector<8x8xf32>
    %c0_25 = arith.constant 0 : index
    %c16 = arith.constant 16 : index
    %73 = vector.load %arg15[%c0_25, %c16] : memref<8x32xf32, #tpu.memory_space<vmem>>, vector<8x8xf32>
    tpu.vector_store %arg15[%c0_25, %c16], %72 {strides = array<i32>} : memref<8x32xf32, #tpu.memory_space<vmem>>, vector<8x8xf32>,
    %74 = vector.extract_strided_slice %8 {offsets = [0, 24], sizes = [8, 8], strides = [1, 1]} : vector<8x32xf32> to vector<8x8xf32>
    %75 = vector.extract_strided_slice %9 {offsets = [0, 24], sizes = [8, 8], strides = [1, 1]} : vector<8x32xf32> to vector<8x8xf32>
    %76 = vector.extract_strided_slice %10 {offsets = [0, 24], sizes = [8, 8], strides = [1, 1]} : vector<8x32xf32> to vector<8x8xf32>
    %cst_26 = arith.constant dense<0.000000e+00> : vector<8x8xf32>
    %77 = tpu.matmul %74, %75, %cst_26 {dimension_numbers = #tpu.dot_dimension_numbers<[1], [1], [0], [0], [0, 0, 1, 0], [], []>} : vector<8x8xf32>, vector<8x8xf32>, vector<8x8xf32> -> vector<8x8xf32>
    %78 = arith.addf %77, %5 : vector<8x8xf32>
    %cst_27 = arith.constant dense<0xFF800000> : vector<8xf32>
    %79 = vector.multi_reduction <maximumf>, %78, %cst_27 [1] : vector<8x8xf32> to vector<8xf32>
    %80 = vector.shape_cast %79 : vector<8xf32> to vector<8x1xf32>
    %81 = vector.broadcast %80 : vector<8x1xf32> to vector<8x8xf32>
    %82 = arith.subf %78, %81 : vector<8x8xf32>
    %83 = math.exp %82 : vector<8x8xf32>
    %cst_28 = arith.constant dense<0.000000e+00> : vector<8xf32>
    %84 = vector.multi_reduction <add>, %83, %cst_28 [1] : vector<8x8xf32> to vector<8xf32>
    %85 = vector.shape_cast %84 : vector<8xf32> to vector<8x1xf32>
    %86 = tpu.reciprocal %85 {approx = true} : vector<8x1xf32> -> vector<8x1xf32>
    %87 = arith.mulf %85, %86 : vector<8x1xf32>
    %cst_29 = arith.constant 2.000000e+00 : f32
    %88 = vector.broadcast %cst_29 : f32 to vector<8x1xf32>
    %89 = arith.subf %88, %87 : vector<8x1xf32>
    %90 = arith.mulf %86, %89 : vector<8x1xf32>
    %cst_30 = arith.constant dense<0.000000e+00> : vector<8x8xf32>
    %91 = tpu.matmul %83, %76, %cst_30 {dimension_numbers = #tpu.dot_dimension_numbers<[1], [0], [0], [1], [0, 0, 1, 1], [], []>} : vector<8x8xf32>, vector<8x8xf32>, vector<8x8xf32> -> vector<8x8xf32>
    %92 = vector.broadcast %90 : vector<8x1xf32> to vector<8x8xf32>
    %93 = arith.mulf %91, %92 : vector<8x8xf32>
    %c0_31 = arith.constant 0 : index
    %c24 = arith.constant 24 : index
    %94 = vector.load %arg15[%c0_31, %c24] : memref<8x32xf32, #tpu.memory_space<vmem>>, vector<8x8xf32>
    tpu.vector_store %arg15[%c0_31, %c24], %93 {strides = array<i32>} : memref<8x32xf32, #tpu.memory_space<vmem>>, vector<8x8xf32>,
    %c0_32 = arith.constant 0 : index
    %c0_33 = arith.constant 0 : index
    %95 = vector.load %arg15[%c0_32, %c0_33] : memref<8x32xf32, #tpu.memory_space<vmem>>, vector<8x32xf32>
    %c0_34 = arith.constant 0 : index
    %c0_35 = arith.constant 0 : index
    %96 = vector.load %arg4[%c0_34, %c0_35] : memref<32x32xf32, #tpu.memory_space<vmem>>, vector<32x32xf32>
    %cst_36 = arith.constant dense<0.000000e+00> : vector<8x32xf32>
    %97 = tpu.matmul %95, %96, %cst_36 {dimension_numbers = #tpu.dot_dimension_numbers<[1], [0], [0], [1], [0, 0, 1, 1], [], []>} : vector<8x32xf32>, vector<32x32xf32>, vector<8x32xf32> -> vector<8x32xf32>
    %c0_37 = arith.constant 0 : index
    %c0_38 = arith.constant 0 : index
    %98 = vector.load %arg5[%c0_37, %c0_38] : memref<1x32xf32, #tpu.memory_space<vmem>>, vector<1x32xf32>
    %99 = vector.broadcast %98 : vector<1x32xf32> to vector<8x32xf32>
    %100 = arith.addf %97, %99 : vector<8x32xf32>
    %101 = arith.addf %100, %1 : vector<8x32xf32>
    %c0_39 = arith.constant 0 : index
    %c0_40 = arith.constant 0 : index
    %102 = vector.load %arg6[%c0_39, %c0_40] : memref<1x32xf32, #tpu.memory_space<vmem>>, vector<1x32xf32>
    %c0_41 = arith.constant 0 : index
    %c0_42 = arith.constant 0 : index
    %103 = vector.load %arg7[%c0_41, %c0_42] : memref<1x32xf32, #tpu.memory_space<vmem>>, vector<1x32xf32>
    %cst_43 = arith.constant dense<0.000000e+00> : vector<8xf32>
    %104 = vector.multi_reduction <add>, %101, %cst_43 [1] : vector<8x32xf32> to vector<8xf32>
    %105 = vector.shape_cast %104 : vector<8xf32> to vector<8x1xf32>
    %cst_44 = arith.constant 3.200000e+01 : f32
    %106 = vector.broadcast %cst_44 : f32 to vector<8x1xf32>
    %107 = arith.divf %105, %106 : vector<8x1xf32>
    %108 = vector.broadcast %107 : vector<8x1xf32> to vector<8x32xf32>
    %109 = arith.subf %101, %108 : vector<8x32xf32>
    %110 = arith.mulf %109, %109 : vector<8x32xf32>
    %cst_45 = arith.constant dense<0.000000e+00> : vector<8xf32>
    %111 = vector.multi_reduction <add>, %110, %cst_45 [1] : vector<8x32xf32> to vector<8xf32>
    %112 = vector.shape_cast %111 : vector<8xf32> to vector<8x1xf32>
    %cst_46 = arith.constant 3.200000e+01 : f32
    %113 = vector.broadcast %cst_46 : f32 to vector<8x1xf32>
    %114 = arith.divf %112, %113 : vector<8x1xf32>
    %cst_47 = arith.constant 9.99999996E-13 : f32
    %115 = vector.broadcast %cst_47 : f32 to vector<8x1xf32>
    %116 = arith.addf %114, %115 : vector<8x1xf32>
    %117 = math.rsqrt %116 : vector<8x1xf32>
    %118 = vector.broadcast %117 : vector<8x1xf32> to vector<8x32xf32>
    %119 = arith.mulf %109, %118 : vector<8x32xf32>
    %120 = vector.broadcast %102 : vector<1x32xf32> to vector<8x32xf32>
    %121 = arith.mulf %119, %120 : vector<8x32xf32>
    %122 = vector.broadcast %103 : vector<1x32xf32> to vector<8x32xf32>
    %123 = arith.addf %121, %122 : vector<8x32xf32>
    %c0_48 = arith.constant 0 : index
    %c0_49 = arith.constant 0 : index
    %124 = vector.load %arg8[%c0_48, %c0_49] : memref<32x64xf32, #tpu.memory_space<vmem>>, vector<32x64xf32>
    %cst_50 = arith.constant dense<0.000000e+00> : vector<8x64xf32>
    %125 = tpu.matmul %123, %124, %cst_50 {dimension_numbers = #tpu.dot_dimension_numbers<[1], [0], [0], [1], [0, 0, 1, 1], [], []>} : vector<8x32xf32>, vector<32x64xf32>, vector<8x64xf32> -> vector<8x64xf32>
    %c0_51 = arith.constant 0 : index
    %c0_52 = arith.constant 0 : index
    %126 = vector.load %arg9[%c0_51, %c0_52] : memref<1x64xf32, #tpu.memory_space<vmem>>, vector<1x64xf32>
    %127 = vector.broadcast %126 : vector<1x64xf32> to vector<8x64xf32>
    %128 = arith.addf %125, %127 : vector<8x64xf32>
    %cst_53 = arith.constant 5.000000e-01 : f32
    %129 = vector.broadcast %cst_53 : f32 to vector<8x64xf32>
    %130 = arith.mulf %129, %128 : vector<8x64xf32>
    %cst_54 = arith.constant 0.707106769 : f32
    %131 = vector.broadcast %cst_54 : f32 to vector<8x64xf32>
    %132 = arith.mulf %128, %131 : vector<8x64xf32>
    %cst_55 = arith.constant 0.000000e+00 : f32
    %133 = vector.broadcast %cst_55 : f32 to vector<8x64xf32>
    %134 = arith.cmpf oge, %132, %133 : vector<8x64xf32>
    %cst_56 = arith.constant 1.000000e+00 : f32
    %cst_57 = arith.constant -1.000000e+00 : f32
    %135 = vector.broadcast %cst_56 : f32 to vector<8x64xf32>
    %136 = vector.broadcast %cst_57 : f32 to vector<8x64xf32>
    %137 = arith.select %134, %135, %136 : vector<8x64xi1>, vector<8x64xf32>
    %138 = math.absf %132 : vector<8x64xf32>
    %cst_58 = arith.constant 0.327591091 : f32
    %139 = vector.broadcast %cst_58 : f32 to vector<8x64xf32>
    %140 = arith.mulf %139, %138 : vector<8x64xf32>
    %cst_59 = arith.constant 1.000000e+00 : f32
    %141 = vector.broadcast %cst_59 : f32 to vector<8x64xf32>
    %142 = arith.addf %141, %140 : vector<8x64xf32>
    %cst_60 = arith.constant 1.000000e+00 : f32
    %143 = vector.broadcast %cst_60 : f32 to vector<8x64xf32>
    %144 = arith.divf %143, %142 : vector<8x64xf32>
    %cst_61 = arith.constant 1.06140542 : f32
    %145 = vector.broadcast %cst_61 : f32 to vector<8x64xf32>
    %146 = arith.mulf %145, %144 : vector<8x64xf32>
    %cst_62 = arith.constant -1.45315206 : f32
    %147 = vector.broadcast %cst_62 : f32 to vector<8x64xf32>
    %148 = arith.addf %146, %147 : vector<8x64xf32>
    %149 = arith.mulf %148, %144 : vector<8x64xf32>
    %cst_63 = arith.constant 1.42141378 : f32
    %150 = vector.broadcast %cst_63 : f32 to vector<8x64xf32>
    %151 = arith.addf %149, %150 : vector<8x64xf32>
    %152 = arith.mulf %151, %144 : vector<8x64xf32>
    %cst_64 = arith.constant -0.284496725 : f32
    %153 = vector.broadcast %cst_64 : f32 to vector<8x64xf32>
    %154 = arith.addf %152, %153 : vector<8x64xf32>
    %155 = arith.mulf %154, %144 : vector<8x64xf32>
    %cst_65 = arith.constant 0.254829586 : f32
    %156 = vector.broadcast %cst_65 : f32 to vector<8x64xf32>
    %157 = arith.addf %155, %156 : vector<8x64xf32>
    %158 = arith.mulf %157, %144 : vector<8x64xf32>
    %cst_66 = arith.constant 0.000000e+00 : f32
    %159 = vector.broadcast %cst_66 : f32 to vector<8x64xf32>
    %160 = arith.subf %159, %138 : vector<8x64xf32>
    %161 = arith.mulf %160, %138 : vector<8x64xf32>
    %162 = math.exp %161 : vector<8x64xf32>
    %163 = arith.mulf %158, %162 : vector<8x64xf32>
    %cst_67 = arith.constant 1.000000e+00 : f32
    %164 = vector.broadcast %cst_67 : f32 to vector<8x64xf32>
    %165 = arith.subf %164, %163 : vector<8x64xf32>
    %166 = arith.mulf %137, %165 : vector<8x64xf32>
    %cst_68 = arith.constant 1.000000e+00 : f32
    %167 = vector.broadcast %cst_68 : f32 to vector<8x64xf32>
    %168 = arith.addf %167, %166 : vector<8x64xf32>
    %169 = arith.mulf %130, %168 : vector<8x64xf32>
    %c0_69 = arith.constant 0 : index
    %c0_70 = arith.constant 0 : index
    %170 = vector.load %arg10[%c0_69, %c0_70] : memref<64x32xf32, #tpu.memory_space<vmem>>, vector<64x32xf32>
    %cst_71 = arith.constant dense<0.000000e+00> : vector<8x32xf32>
    %171 = tpu.matmul %169, %170, %cst_71 {dimension_numbers = #tpu.dot_dimension_numbers<[1], [0], [0], [1], [0, 0, 1, 1], [], []>} : vector<8x64xf32>, vector<64x32xf32>, vector<8x32xf32> -> vector<8x32xf32>
    %c0_72 = arith.constant 0 : index
    %c0_73 = arith.constant 0 : index
    %172 = vector.load %arg11[%c0_72, %c0_73] : memref<1x32xf32, #tpu.memory_space<vmem>>, vector<1x32xf32>
    %173 = vector.broadcast %172 : vector<1x32xf32> to vector<8x32xf32>
    %174 = arith.addf %171, %173 : vector<8x32xf32>
    %175 = arith.addf %123, %174 : vector<8x32xf32>
    %c0_74 = arith.constant 0 : index
    %c0_75 = arith.constant 0 : index
    %176 = vector.load %arg12[%c0_74, %c0_75] : memref<1x32xf32, #tpu.memory_space<vmem>>, vector<1x32xf32>
    %c0_76 = arith.constant 0 : index
    %c0_77 = arith.constant 0 : index
    %177 = vector.load %arg13[%c0_76, %c0_77] : memref<1x32xf32, #tpu.memory_space<vmem>>, vector<1x32xf32>
    %cst_78 = arith.constant dense<0.000000e+00> : vector<8xf32>
    %178 = vector.multi_reduction <add>, %175, %cst_78 [1] : vector<8x32xf32> to vector<8xf32>
    %179 = vector.shape_cast %178 : vector<8xf32> to vector<8x1xf32>
    %cst_79 = arith.constant 3.200000e+01 : f32
    %180 = vector.broadcast %cst_79 : f32 to vector<8x1xf32>
    %181 = arith.divf %179, %180 : vector<8x1xf32>
    %182 = vector.broadcast %181 : vector<8x1xf32> to vector<8x32xf32>
    %183 = arith.subf %175, %182 : vector<8x32xf32>
    %184 = arith.mulf %183, %183 : vector<8x32xf32>
    %cst_80 = arith.constant dense<0.000000e+00> : vector<8xf32>
    %185 = vector.multi_reduction <add>, %184, %cst_80 [1] : vector<8x32xf32> to vector<8xf32>
    %186 = vector.shape_cast %185 : vector<8xf32> to vector<8x1xf32>
    %cst_81 = arith.constant 3.200000e+01 : f32
    %187 = vector.broadcast %cst_81 : f32 to vector<8x1xf32>
    %188 = arith.divf %186, %187 : vector<8x1xf32>
    %cst_82 = arith.constant 9.99999996E-13 : f32
    %189 = vector.broadcast %cst_82 : f32 to vector<8x1xf32>
    %190 = arith.addf %188, %189 : vector<8x1xf32>
    %191 = math.rsqrt %190 : vector<8x1xf32>
    %192 = vector.broadcast %191 : vector<8x1xf32> to vector<8x32xf32>
    %193 = arith.mulf %183, %192 : vector<8x32xf32>
    %194 = vector.broadcast %176 : vector<1x32xf32> to vector<8x32xf32>
    %195 = arith.mulf %193, %194 : vector<8x32xf32>
    %196 = vector.broadcast %177 : vector<1x32xf32> to vector<8x32xf32>
    %197 = arith.addf %195, %196 : vector<8x32xf32>
    %c0_83 = arith.constant 0 : index
    %c0_84 = arith.constant 0 : index
    %c0_85 = arith.constant 0 : index
    %198 = vector.load %arg14[%c0_83, %c0_84, %c0_85] : memref<1x8x32xf32, #tpu.memory_space<vmem>>, vector<1x8x32xf32>
    %199 = vector.shape_cast %198 : vector<1x8x32xf32> to vector<8x32xf32>
    %200 = vector.shape_cast %197 : vector<8x32xf32> to vector<1x8x32xf32>
    tpu.vector_store %arg14[%c0_83, %c0_84, %c0_85], %200 {strides = array<i32>} : memref<1x8x32xf32, #tpu.memory_space<vmem>>, vector<1x8x32xf32>,
    return
  }
  func.func @transform_0(%arg0: i32) -> (i32, i32, i32) {
    %c0_i32 = arith.constant 0 : i32
    %c0_i32_0 = arith.constant 0 : i32
    %c0_i32_1 = arith.constant 0 : i32
    return %arg0, %c0_i32, %c0_i32_0 : i32, i32, i32
  }
  func.func @transform_1(%arg0: i32) -> (i32, i32, i32) {
    %c0_i32 = arith.constant 0 : i32
    %c0_i32_0 = arith.constant 0 : i32
    %c0_i32_1 = arith.constant 0 : i32
    return %arg0, %c0_i32, %c0_i32_0 : i32, i32, i32
  }
  func.func @transform_2(%arg0: i32) -> (i32, i32) {
    %c0_i32 = arith.constant 0 : i32
    %c0_i32_0 = arith.constant 0 : i32
    %c0_i32_1 = arith.constant 0 : i32
    return %c0_i32, %c0_i32_0 : i32, i32
  }
  func.func @transform_3(%arg0: i32) -> (i32, i32) {
    %c0_i32 = arith.constant 0 : i32
    %c0_i32_0 = arith.constant 0 : i32
    %c0_i32_1 = arith.constant 0 : i32
    return %c0_i32, %c0_i32_0 : i32, i32
  }
  func.func @transform_4(%arg0: i32) -> (i32, i32) {
    %c0_i32 = arith.constant 0 : i32
    %c0_i32_0 = arith.constant 0 : i32
    %c0_i32_1 = arith.constant 0 : i32
    return %c0_i32, %c0_i32_0 : i32, i32
  }
  func.func @transform_5(%arg0: i32) -> (i32, i32) {
    %c0_i32 = arith.constant 0 : i32
    %c0_i32_0 = arith.constant 0 : i32
    %c0_i32_1 = arith.constant 0 : i32
    return %c0_i32, %c0_i32_0 : i32, i32
  }
  func.func @transform_6(%arg0: i32) -> (i32, i32) {
    %c0_i32 = arith.constant 0 : i32
    %c0_i32_0 = arith.constant 0 : i32
    %c0_i32_1 = arith.constant 0 : i32
    return %c0_i32, %c0_i32_0 : i32, i32
  }
  func.func @transform_7(%arg0: i32) -> (i32, i32) {
    %c0_i32 = arith.constant 0 : i32
    %c0_i32_0 = arith.constant 0 : i32
    %c0_i32_1 = arith.constant 0 : i32
    return %c0_i32, %c0_i32_0 : i32, i32
  }
  func.func @transform_8(%arg0: i32) -> (i32, i32) {
    %c0_i32 = arith.constant 0 : i32
    %c0_i32_0 = arith.constant 0 : i32
    %c0_i32_1 = arith.constant 0 : i32
    return %c0_i32, %c0_i32_0 : i32, i32
  }
  func.func @transform_9(%arg0: i32) -> (i32, i32) {
    %c0_i32 = arith.constant 0 : i32
    %c0_i32_0 = arith.constant 0 : i32
    %c0_i32_1 = arith.constant 0 : i32
    return %c0_i32, %c0_i32_0 : i32, i32
  }
  func.func @transform_10(%arg0: i32) -> (i32, i32) {
    %c0_i32 = arith.constant 0 : i32
    %c0_i32_0 = arith.constant 0 : i32
    %c0_i32_1 = arith.constant 0 : i32
    return %c0_i32, %c0_i32_0 : i32, i32
  }
  func.func @transform_11(%arg0: i32) -> (i32, i32) {
    %c0_i32 = arith.constant 0 : i32
    %c0_i32_0 = arith.constant 0 : i32
    %c0_i32_1 = arith.constant 0 : i32
    return %c0_i32, %c0_i32_0 : i32, i32
  }
  func.func @transform_12(%arg0: i32) -> (i32, i32) {
    %c0_i32 = arith.constant 0 : i32
    %c0_i32_0 = arith.constant 0 : i32
    %c0_i32_1 = arith.constant 0 : i32
    return %c0_i32, %c0_i32_0 : i32, i32
  }
  func.func @transform_13(%arg0: i32) -> (i32, i32, i32) {
    %c0_i32 = arith.constant 0 : i32
    %c0_i32_0 = arith.constant 0 : i32
    %c0_i32_1 = arith.constant 0 : i32
    return %arg0, %c0_i32, %c0_i32_0 : i32, i32, i32
  }
}

</mosaic_0001>

<bundles_post_ra>
// kernel: tpu_custom_call.1
= control target key start
LH: loop header
LB: loop body
LE: loop exit
PB: predicated region body
PF: predicated region fallthrough
CT: control target
= control target key end

     0   :  { %s2875_s0 = inlined_call_operand.hbm [shape: f32[2,8,32], index: 0, kind: input, shape index: {}]   ;;  %s2876_s1 = inlined_call_operand.vmem [shape: f32[2,1,8], index: 1, kind: input, shape index: {}]   ;;  %s2877_s2 = inlined_call_operand.vmem [shape: f32[32,96], index: 2, kind: input, shape index: {}]   ;;  %s2878_s3 = inlined_call_operand.vmem [shape: f32[32,32], index: 3, kind: input, shape index: {}]   ;;  %s2879_s4 = inlined_call_operand.hbm [shape: f32[1,32], index: 4, kind: input, shape index: {}]   ;;  %s2880_s5 = inlined_call_operand.hbm [shape: f32[1,32], index: 5, kind: input, shape index: {}]   ;;  %s2881_s6 = inlined_call_operand.hbm [shape: f32[1,32], index: 6, kind: input, shape index: {}]   ;;  %s2882_s7 = inlined_call_operand.vmem [shape: f32[32,64], index: 7, kind: input, shape index: {}]   ;;  %s2883_s8 = inlined_call_operand.hbm [shape: f32[1,64], index: 8, kind: input, shape index: {}]   ;;  %s2884_s9 = inlined_call_operand.vmem [shape: f32[64,32], index: 9, kind: input, shape index: {}]   ;;  %s2885_s10 = inlined_call_operand.vmem [shape: f32[1,32], index: 10, kind: input, shape index: {}]   ;;  %s2886_s11 = inlined_call_operand.vmem [shape: f32[1,32], index: 11, kind: input, shape index: {}]   ;;  %s2887_s12 = inlined_call_operand.vmem [shape: f32[1,32], index: 12, kind: input, shape index: {}]   ;;  %s2888_s13 = inlined_call_operand.hbm [shape: f32[2,8,32], index: 13, kind: output, shape index: {}]  }
   0x1   :  { %2893 = sst [smem:[#allocation17_spill]] %s2875_s0 }
   0x2   :  { %2894 = sst [smem:[#allocation18_spill]] %s2879_s4 }
   0x3   :  { %2895 = sst [smem:[#allocation19_spill]] %s2880_s5 }
   0x4   :  { %2896 = sst [smem:[#allocation20_spill]] %s2885_s10 }
   0x5   :  { %2897 = sst [smem:[#allocation21_spill]] %s2886_s11 }
   0x6   :  { %2898 = sst [smem:[#allocation22_spill]] %s2887_s12 }
   0x7   :  { %2899 = sst [smem:[#allocation23_spill]] %s2888_s13 }
   0x8   :  { %18 = vsyncpa [#allocation4], 0 }
   0x9   :  { %20 = vsyncpa [#allocation4 + $0x1], 0 }
   0xa   :  { %21 = vsyncpa [#allocation7], 0 }
   0xb   :  { %22 = vsyncpa [#allocation10], 0 }
   0xc   :  { %23 = vsyncpa [#allocation5], 0 }
   0xd   :  { %25 = vsyncpa [#allocation5 + $0x1], 0  ;;  %s2422_s25 = smov 0   ;;  %s2424_s26 = smov 0  }
   0xe   :  { %s2426_s27 = smov 0   ;;  %s2428_s28 = smov 0  }
   0xf LB: > { %s2328_s29 = smov [#allocation6]   ;;  %s2443_s14 = sadd.s32 4294967295, %s2326_s28   ;;  %s2326_s28 = sphi %s2428_s28, %s2927_s28   ;;  %s2322_s27 = sphi %s2426_s27, %s2926_s27   ;;  %s2318_s26 = sphi %s2424_s26, %s2925_s26   ;;  %s2314_s25 = sphi %s2422_s25, %s2924_s25  }
  0x10   : > { %s364_s30 = sshll.u32 %s2328_s29, 4  ;;  %p1776_p0 = scmp.ge.s32.totalorder %s2326_s28, 1  ;;  %s2448_s30 = int_to_ptr.vmem [resolvable:$true] %s364_s30 }
  0x11   : > { %p2890_p1 = scmp.eq.s32.totalorder %s2443_s14, 0  ;;  %p345_p2 = scmp.lt.s32.totalorder %s2326_s28, 3 }
  0x12   : > { %s2329_s16 = smov [#allocation9]   ;;  %s2330_s18 = smov [#allocation8]  }
  0x13   : > { %p2450_p3 = pnand %p1776_p0, %p345_p2  ;;  %s386_s17 = sshll.u32 %s2329_s16, 4  ;;  %s2457_s17 = int_to_ptr.vmem [resolvable:$true] %s386_s17 }
  0x14   : > { %s375_s19 = sshll.u32 %s2330_s18, 4  ;;  %s2331_s21 = smov [#allocation11]   ;;  %s2465_s19 = int_to_ptr.vmem [resolvable:$true] %s375_s19 }
  0x15   : > { %s2900_s15 = scalar_select %p2450_p3, 1, 0 }
  0x16   : > { %p2001_p5 = pneg %p2450_p3  ;;  %s2467_s22 = sshll.u32 %s2331_s21, 4  ;;  %s401_s22 = int_to_ptr.vmem [resolvable:$true] %s2467_s22 }
  0x17   : > { %s2902_s4 = sld [smem:[#allocation18_spill]] }
  0x18   : > { %p2461_p6 = pnand %p2001_p5, %p2890_p1 }
  0x1a   : > { %p2477_p8 = pneg %p2461_p6 }
  0x1d   : > { %s2110_s29 = scalar_lea.hbm %s2902_s4, 16 }
  0x1e   : > { %p2111_p7 = scmp.ne.s32.totalorder %s2902_s4, %s2110_s29  ;;  %p2117_p11 = scmp.lt.u32.totalorder %s2110_s29, %s2902_s4 }
  0x20   : > { %p2113_p9 = pnand %p2477_p8, %p2111_p7 }
  0x22   : > { %p2114_p10 = pneg %p2113_p9 }
  0x24   : > { %p2119_p12 = pnand %p2117_p11, %p2114_p10 }
  0x26   : > { %2122 = shalt.err (!%p2119_p12)
}
  0x27   : > { %s2123_s13 = scalar_lea.vmem %s2448_s30, 16  ;;  %s2130_s23 = scalar_lea.vmem %s2448_s30, 32 }
  0x28   : > { %p2124_p13 = scmp.ne.s32.totalorder %s2448_s30, %s2123_s13  ;;  %p2131_p5 = scmp.lt.s32.totalorder %s2448_s30, %s2448_s30 }
  0x29   : > { %p2132_p7 = scmp.lt.s32.totalorder %s2130_s23, %s2123_s13 }
  0x2a   : > { %p2126_p0 = pnand %p2124_p13, %p2477_p8 }
  0x2b   : > { %p2133_p9 = por %p2132_p7, %p2131_p5 }
  0x2c   : > { %p2127_p2 = pneg %p2126_p0 }
  0x2e   : > { %p2134_p4 = pnand %p2133_p9, %p2127_p2 }
  0x30   : > { %2137 = shalt.err (!%p2134_p4)
}
  0x31   : > { %2004 = dma.hbm_to_vmem [thread:$0]  (!%p2461_p6), %s2902_s4, 16, %s2448_s30, [#allocation7]  }
  0x32   : > { %s2138_s21 = scalar_lea.hbm %s2881_s6, 16 }
  0x33   : > { %p2139_p10 = scmp.ne.s32.totalorder %s2881_s6, %s2138_s21  ;;  %p2145_p4 = scmp.lt.u32.totalorder %s2138_s21, %s2881_s6 }
  0x35   : > { %p2141_p11 = pnand %p2139_p10, %p2477_p8 }
  0x37   : > { %p2142_p12 = pneg %p2141_p11 }
  0x39   : > { %p2147_p13 = pnand %p2145_p4, %p2142_p12 }
  0x3b   : > { %2150 = shalt.err (!%p2147_p13)
}
  0x3c   : > { %s2151_s30 = scalar_lea.vmem %s2457_s17, 16  ;;  %s2158_s10 = scalar_lea.vmem %s2457_s17, 32 }
  0x3d   : > { %p2152_p0 = scmp.ne.s32.totalorder %s2457_s17, %s2151_s30  ;;  %p2159_p7 = scmp.lt.s32.totalorder %s2457_s17, %s2457_s17 }
  0x3e   : > { %p2160_p9 = scmp.lt.s32.totalorder %s2158_s10, %s2151_s30 }
  0x3f   : > { %p2154_p2 = pnand %p2152_p0, %p2477_p8 }
  0x40   : > { %p2161_p10 = por %p2160_p9, %p2159_p7 }
  0x41   : > { %p2155_p5 = pneg %p2154_p2 }
  0x43   : > { %p2162_p11 = pnand %p2161_p10, %p2155_p5 }
  0x45   : > { %2165 = shalt.err (!%p2162_p11)
}
  0x46   : > { %2010 = dma.hbm_to_vmem [thread:$0]  (!%p2461_p6), %s2881_s6, 16, %s2457_s17, [#allocation10]  }
  0x47   : > { %s2904_s5 = sld [smem:[#allocation19_spill]] }
  0x4d   : > { %s2166_s16 = scalar_lea.hbm %s2904_s5, 16 }
  0x4e   : > { %p2167_p12 = scmp.ne.s32.totalorder %s2904_s5, %s2166_s16  ;;  %p2173_p0 = scmp.lt.u32.totalorder %s2166_s16, %s2904_s5 }
  0x50   : > { %p2169_p4 = pnand %p2167_p12, %p2477_p8 }
  0x52   : > { %p2170_p13 = pneg %p2169_p4 }
  0x54   : > { %p2175_p2 = pnand %p2173_p0, %p2170_p13 }
  0x56   : > { %2178 = shalt.err (!%p2175_p2)
}
  0x57   : > { %s2179_s17 = scalar_lea.vmem %s2465_s19, 16  ;;  %s2186_s10 = scalar_lea.vmem %s2465_s19, 32 }
  0x58   : > { %p2180_p5 = scmp.ne.s32.totalorder %s2465_s19, %s2179_s17  ;;  %p2187_p10 = scmp.lt.s32.totalorder %s2465_s19, %s2465_s19 }
  0x59   : > { %p2188_p11 = scmp.lt.s32.totalorder %s2186_s10, %s2179_s17 }
  0x5a   : > { %p2182_p7 = pnand %p2180_p5, %p2477_p8 }
  0x5b   : > { %p2189_p12 = por %p2188_p11, %p2187_p10 }
  0x5c   : > { %p2183_p9 = pneg %p2182_p7 }
  0x5e   : > { %p2190_p4 = pnand %p2189_p12, %p2183_p9 }
  0x60   : > { %2193 = shalt.err (!%p2190_p4)
}
  0x61   : > { %2007 = dma.hbm_to_vmem [thread:$0]  (!%p2461_p6), %s2904_s5, 16, %s2465_s19, [#allocation7]  }
  0x62   : > { %s2194_s16 = scalar_lea.hbm %s2883_s8, 16 }
  0x63   : > { %p2195_p13 = scmp.ne.s32.totalorder %s2883_s8, %s2194_s16  ;;  %p2201_p5 = scmp.lt.u32.totalorder %s2194_s16, %s2883_s8 }
  0x65   : > { %p2197_p0 = pnand %p2195_p13, %p2477_p8 }
  0x67   : > { %p2198_p2 = pneg %p2197_p0 }
  0x69   : > { %p2203_p7 = pnand %p2201_p5, %p2198_p2 }
  0x6b   : > { %2206 = shalt.err (!%p2203_p7)
}
  0x6c   : > { %s2207_s17 = scalar_lea.vmem %s401_s22, 16  ;;  %s2214_s19 = scalar_lea.vmem %s401_s22, 32 }
  0x6d   : > { %p2208_p9 = scmp.ne.s32.totalorder %s401_s22, %s2207_s17  ;;  %p2215_p12 = scmp.lt.s32.totalorder %s401_s22, %s401_s22 }
  0x6e   : > { %p2216_p4 = scmp.lt.s32.totalorder %s2214_s19, %s2207_s17 }
  0x6f   : > { %p2210_p10 = pnand %p2208_p9, %p2477_p8 }
  0x70   : > { %p2217_p1 = por %p2216_p4, %p2215_p12 }
  0x71   : > { %p2211_p11 = pneg %p2210_p10 }
  0x73   : > { %p2218_p3 = pnand %p2217_p1, %p2211_p11 }
  0x75   : > { %2221 = shalt.err (!%p2218_p3)
}
  0x76   : > { %2013 = dma.hbm_to_vmem [thread:$0]  (!%p2461_p6), %s2883_s8, 16, %s401_s22, [#allocation10]  }
  0x77   : > { %s1775_s18 = sadd.s32 4294967294, %s2326_s28   ;;  %s2568_s20 = sadd.s32 1, %s2326_s28  }
  0x78   : > { %s35_s12 = ssub.s32 %s2326_s28, %s2568_s20  ;;  %s38_s24 = sadd.s32 1, %s2322_s27 }
  0x79   : > { %p36_p1 = scmp.eq.s32.totalorder %s35_s12, 0  ;;  %p45_p3 = scmp.ne.s32.totalorder %s2322_s27, %s2318_s26 }
  0x7a   : > { %p46_p8 = scmp.eq.s32.totalorder %s2326_s28, 0  ;;  %p51_p13 = scmp.ne.s32.totalorder %s2318_s26, %s2314_s25 }
  0x7b   : > { %s2579_s29 = scalar_select %p36_p1, %s2322_s27, %s38_s24  }
  0x7c   : > { %p2581_p0 = por %p46_p8, %p45_p3  ;;  %p2906_p2 = scmp.eq.s32.totalorder %s2443_s14, 0 }
  0x7d   : > { %p332_p5 = scmp.eq.s32.totalorder %s2443_s14, 1  ;;  %p338_p7 = scmp.eq.s32.totalorder %s1775_s18, 1 }
  0x7e   : > { %p2587_p6 = por %p2906_p2, %p51_p13  ;;  %p2026_p9 = scmp.lt.s32.totalorder %s2326_s28, 2 }
  0x7f   : > { %s423_s21 = sand.u32 1, %s2322_s27   ;;  %p2594_p10 = por %p332_p5, %p45_p3 }
  0x80   : > { %p2598_p11 = por %p338_p7, %p51_p13  ;;  %s1782_s30 = sshll.u32 %s423_s21, 3 }
  0x81   : > { %s2908_s13 = scalar_select %p2594_p10, 1, 0 }
  0x82   : > { %s2909_s23 = scalar_select %p2598_p11, 1, 0 }
  0x83   : > { %s1783_s17 = sshll.u32 %s2326_s28, 7  ;;  %s2910_s0 = sld [smem:[#allocation17_spill]] }
  0x84   : > { %s427_s18 = scalar_lea.vmem [#allocation3], %s1782_s30  ;;  %p2612_p12 = pnand %p2026_p9, %p2581_p0 }
  0x85   : > { %s434_s12 = sshll.u32 %s427_s18, 4  ;;  %s424_s4 = scalar_lea.sflag [#allocation4], %s423_s21  ;;  %s2608_s12 = int_to_ptr.vmem [resolvable:$true] %s434_s12 }
  0x86   : > { %p2224_p1 = pneg %p2612_p12 }
  0x89   : > { %s2606_s11 = scalar_lea.hbm %s2910_s0, %s1783_s17  ;;  %s2227_s19 = scalar_lea.hbm %s2910_s0, 256 }
  0x8a   : > { %s2222_s5 = scalar_lea.hbm %s2606_s11, 128  ;;  %p2228_p13 = scmp.lt.u32.totalorder %s2606_s11, %s2910_s0 }
  0x8b   : > { %p2223_p4 = scmp.ne.s32.totalorder %s2606_s11, %s2222_s5  ;;  %p2229_p0 = scmp.lt.u32.totalorder %s2227_s19, %s2222_s5 }
  0x8c   : > { %p2231_p5 = scmp.lt.u32.totalorder %s2222_s5, %s2606_s11 }
  0x8d   : > { %p2225_p3 = pnand %p2224_p1, %p2223_p4  ;;  %p2230_p2 = por %p2229_p0, %p2228_p13 }
  0x8f   : > { %p2226_p8 = pneg %p2225_p3  ;;  %p2232_p7 = por %p2231_p5, %p2230_p2 }
  0x91   : > { %p2233_p9 = pnand %p2232_p7, %p2226_p8 }
  0x93   : > { %2236 = shalt.err (!%p2233_p9)
}
  0x94   : > { %s2237_s21 = scalar_lea.vmem %s2608_s12, 128  ;;  %s2332_s18 = smov [#allocation3]  }
  0x95   : > { %p2238_p4 = scmp.ne.s32.totalorder %s2608_s12, %s2237_s21  ;;  %s2242_s30 = sshll.u32 %s2332_s18, 4  ;;  %s2243_s30 = int_to_ptr.vmem [resolvable:$false] %s2242_s30 }
  0x96   : > { %s2244_s17 = scalar_lea.vmem %s2243_s30, 256  ;;  %p2245_p10 = scmp.lt.s32.totalorder %s2608_s12, %s2243_s30 }
  0x97   : > { %p2240_p3 = pnand %p2238_p4, %p2224_p1  ;;  %p2246_p13 = scmp.lt.s32.totalorder %s2244_s17, %s2237_s21 }
  0x99   : > { %p2241_p11 = pneg %p2240_p3  ;;  %p2247_p0 = por %p2246_p13, %p2245_p10 }
  0x9b   : > { %p2248_p2 = pnand %p2247_p0, %p2241_p11 }
  0x9d   : > { %2251 = shalt.err (!%p2248_p2)
}
  0x9e   : > { %2017 = dma.hbm_to_vmem [thread:$0]  (!%p2612_p12), %s2606_s11, 128, %s2608_s12, %s424_s4  }
  0x9f   : > { %p2912_p8 = scmp.ne.s32.totalorder %s2900_s15, 0 }
  0xa0   : > { %s2644_s5 = sand.u32 (!%p2912_p8), 1, %s2318_s26  }
  0xa1   : > { %449 = sbr.rel (%p2912_p8) target bundleno = 2610 (0xa32), region = 72  ;;  %s1785_s19 = sshll.u32 (!%p2912_p8), %s2644_s5, 3 }
  0xa2   : > { %s452_s16 = scalar_lea.sflag (!%p2912_p8), [#allocation4], %s2644_s5  ;;  %s455_s10 = scalar_lea.vmem (!%p2912_p8), [#allocation3], %s1785_s19 }
  0xa8   : > { %2297 = dma.done.wait (%p2587_p6), %s452_s16, 128  }
  0xa9   : > { %2299 = vsyncadd (%p2587_p6), %s452_s16, 4294967168  ;;  %p2913_p10 = scmp.eq.s32.totalorder %s2443_s14, 0 }
  0xab   : > { %2301 = dma.done.wait (%p2913_p10), [#allocation7], 32   ;;  %p2914_p11 = pmov %p2913_p10 }
  0xac   : > { %p2915_p12 = pmov %p2913_p10 }
  0xad   : > { %2303 = vsyncadd (%p2914_p11), [#allocation7], 4294967264 }
  0xae   : > { %2305 = dma.done.wait (%p2915_p12), [#allocation10], 32   ;;  %p2916_p1 = pmov %p2913_p10 }
  0xaf   : > { %v2333_v0 = vmov 0.0|0.0   ;;  %vm2334_vm0 = vmmov 0   ;;  %v2335_v1 = vmov 0.0   ;;  %v528_v2 = vld [vmem:[%s2877_s2] sm:$0xff]  ;;  %v529_v3 = vld [vmem:[%s2877_s2 + $0x8] sm:$0xff]  ;;  %v530_v4 = vld [vmem:[%s2877_s2 + $0x10] sm:$0xff] }
  0xb0   : > { %2307 = vsyncadd (%p2916_p1), [#allocation10], 4294967264  ;;  %1951 = vmatprep.subr.bf16.mxu1 %v2333_v0  ;;  %1867 = vmatprep.mubr.msk.f32.mxu1 %vm2334_vm0, %v2335_v1  ;;  %v1952_v5 = vpack.c.bf16 %v529_v3, %v528_v2  ;;  %v531_v6 = vld [vmem:[%s2877_s2 + $0x18] sm:$0xff]  ;;  %v2681_v8 = vld [vmem:[%s455_s10] sm:$0xff]  ;;  %vm532_vm1 = vcmask 261120   ;;  %s2336_s30 = smov 120  }
  0xb1   : > { %1880 = vmatprep.subr.mxu0 %v2335_v1  ;;  %1882 = vmatprep.mubr.msk.f32.mxu0 %vm2334_vm0, %v2335_v1  ;;  %v1955_v7 = vpack.c.bf16 %v531_v6, %v530_v4  ;;  %s2337_s17 = smov 96   ;;  %s2338_s16 = smov 80   ;;  %vm609_vm2 = vcmask 64512   ;;  %vm947_vm3 = vcmask 130112   ;;  %vm1121_vm4 = vcmask 195712  }
  0xb2   : > { %1953 = vmatpush3.bf16.msra.mxu1 %v1952_v5  ;;  %s2339_s10 = smov 88   ;;  %s2340_s4 = smov 72   ;;  %vm1295_vm5 = vcmask 261312   ;;  %vm1539_vm7 = vcmask 523264  }
  0xb3   : > { %1954 = vmatprep.subr.bf16.mxu1 %v2333_v0  ;;  %s2341_s15 = smov 112   ;;  %s2342_s22 = smov 104  }
  0xb4   : > { %p517_p6 = scmp.lt.s32.totalorder %s2443_s14, 1  ;;  %s2343_s18 = smov 56  }
  0xb5   : > { %p2921_p7 = scmp.ne.s32.totalorder %s2908_s13, 0 }
  0xb6   : > { %1956 = vmatpush3.bf16.msra.mxu1 %v1955_v7  ;;  %s518_s11 = scalar_select %p517_p6, %s2443_s14, 1 }
  0xb7   : > { %1870 = vmatprep.subr.mxu1 %v2335_v1 }
  0xb8   : > { %s519_s21 = scalar_lea.vmem %s2876_s1, %s518_s11  ;;  %s2918_s11 = sld [smem:[#allocation21_spill]] }
  0xb9   : > { %1868 = vmatmul.mubr.msk.f32.vlgmr.msra.gmra.mrb[0].mxu1 %vm532_vm1, %v2681_v8  ;;  %v1791_v18 = vld [vmem:[%s519_s21] ss:$0 sm:$0xff]  ;;  %s2919_s21 = sld [smem:[#allocation22_spill]] }
  0xba   : > { %1872 = vmatprep.mubr.msk.f32.mxu1 %vm2334_vm0, %v2335_v1 }
 0x18c   : > { %v2688_v9 = vpop.f32.mrb[0].mxu1 }
 0x18d   : > { %775 = vrot.lane.b32.xlu1 %v2688_v9, %s2336_s30  ;;  %607 = vrot.lane.b32.xlu0 %v2688_v9, %s2337_s17  ;;  %v1869_v10 = vpop.f32.mrb[1].mxu1  ;;  %s2344_s30 = smov 64   ;;  %s2345_s17 = smov 40  }
 0x191   : > { %951 = vrot.lane.b32.xlu1 %v2688_v9, %s2338_s16  ;;  %777 = vrot.lane.b32.xlu0 %v2688_v9, %s2339_s10  ;;  %s2346_s16 = smov 48   ;;  %s2347_s10 = smov 8  }
 0x195   : > { %1125 = vrot.lane.b32.xlu1 %v2688_v9, %s2340_s4  ;;  %949 = vrot.lane.b32.xlu0 %v2688_v9, %s2341_s15  ;;  %s2917_s4 = sld [smem:[#allocation20_spill]]  ;;  %s1645_s15 = scalar_lea.sflag [#allocation5], %s2644_s5 }
 0x199   : > { %1123 = vrot.lane.b32.xlu0 %v2688_v9, %s2342_s22 }
 0x1ff   : > { %v776_v11 = vpop.permute.xlu1 %775  ;;  %v608_v12 = vpop.permute.xlu0 %607 }
 0x200   : > { %1871 = vmatpush3.xpose.msk.msra.mxu1 %vm609_vm2, %v608_v12 }
 0x201   : > { %1875 = vmatprep.subr.mxu1 %v2335_v1 }
 0x203   : > { %1873 = vmatmul.mubr.msk.f32.vlgmr.msra.gmra.mrb[2].mxu1 %vm609_vm2, %v2688_v9  ;;  %v778_v13 = vpop.permute.xlu0 %777  ;;  %v952_v14 = vpop.permute.xlu1 %951 }
 0x204   : > { %1881 = vmatpush3.xpose.msk.msra.mxu0 %vm609_vm2, %v778_v13  ;;  %1877 = vmatprep.mubr.msk.f32.mxu1 %vm2334_vm0, %v2335_v1 }
 0x205   : > { %1890 = vmatprep.subr.mxu0 %v2335_v1 }
 0x207   : > { %1883 = vmatmul.mubr.msk.f32.vlgmr.msra.gmra.mrb[0].mxu0 %vm609_vm2, %v776_v11  ;;  %v950_v15 = vpop.permute.xlu0 %949  ;;  %v1126_v16 = vpop.permute.xlu1 %1125 }
 0x208   : > { %1891 = vmatpush3.xpose.msk.msra.mxu0 %vm609_vm2, %v952_v14  ;;  %1892 = vmatprep.mubr.msk.f32.mxu0 %vm2334_vm0, %v2335_v1 }
 0x209   : > { %1900 = vmatprep.subr.mxu0 %v2335_v1 }
 0x20b   : > { %1893 = vmatmul.mubr.msk.f32.vlgmr.msra.gmra.mrb[2].mxu0 %vm609_vm2, %v950_v15  ;;  %v1124_v17 = vpop.permute.xlu0 %1123 }
 0x20c   : > { %1901 = vmatpush3.xpose.msk.msra.mxu0 %vm609_vm2, %v1126_v16  ;;  %1902 = vmatprep.mubr.msk.f32.mxu0 %vm2334_vm0, %v2335_v1 }
 0x20d   : > { %1957 = vmatprep.subr.bf16.mxu0 %v2333_v0 }
 0x20f   : > { %1903 = vmatmul.mubr.msk.f32.vlgmr.msra.gmra.mrb[4].mxu0 %vm609_vm2, %v1124_v17 }
 0x210   : > { %1918 = vmatprep.mubr.msk.f32.mxu0 %vm2334_vm0, %v2335_v1 }
 0x2d6   : > { %v680_v19 = vpop.f32.mrb[2].mxu1 }
 0x2d7   : > { %v681_v20 = vadd.f32 %v1791_v18, %v680_v19  ;;  %v1874_v21 = vpop.f32.mrb[3].mxu1 }
 0x2d8   : > { %v1298_v21 = vld [vmem:[%s2878_s3] sm:$0xff] }
 0x2d9   : > { %v684_v22 = vsel %vm609_vm2, %v681_v20, -inf }
 0x2da   : > { %v849_v23 = vpop.f32.mrb[0].mxu0  ;;  %685 = vmax.xlane.f32.xlu1 %v684_v22  ;;  %v1299_v22 = vld [vmem:[%s2878_s3 + $0x8] sm:$0xff] }
 0x2db   : > { %v850_v24 = vadd.f32 %v1791_v18, %v849_v23  ;;  %v1884_v25 = vpop.f32.mrb[1].mxu0 }
 0x2dc   : > { %v1300_v25 = vld [vmem:[%s2878_s3 + $0x10] sm:$0xff] }
 0x2dd   : > { %v853_v26 = vsel %vm609_vm2, %v850_v24, -inf }
 0x2de   : > { %854 = vmax.xlane.f32.xlu0 %v853_v26  ;;  %v1023_v27 = vpop.f32.mrb[2].mxu0  ;;  %v1301_v26 = vld [vmem:[%s2878_s3 + $0x18] sm:$0xff] }
 0x2df   : > { %v1024_v28 = vadd.f32 %v1791_v18, %v1023_v27  ;;  %v1894_v29 = vpop.f32.mrb[3].mxu0 }
 0x2e1   : > { %v1027_v30 = vsel %vm609_vm2, %v1024_v28, -inf }
 0x2e2   : > { %1028 = vmax.xlane.f32.xlu0 %v1027_v30  ;;  %v1197_v31 = vpop.f32.mrb[4].mxu0  ;;  %v1961_v30 = vpack.c.bf16 %v1301_v26, %v1300_v25 }
 0x2e3   : > { %v1904_v32 = vpop.f32.mrb[5].mxu0  ;;  %v1198_v33 = vadd.f32 %v1791_v18, %v1197_v31 }
 0x2e5   : > { %v1201_v34 = vsel %vm609_vm2, %v1198_v33, -inf }
 0x2eb   : > { %866 = vrot.lane.b32.xlu1 %v2688_v9, %s2343_s18  ;;  %s1816_s18 = sshll.u32 %s2443_s14, 7  ;;  %s2351_s14 = smov [#allocation12]  }
 0x2f8   : > { %697 = vrot.lane.b32.xlu0 %v2688_v9, %s2344_s30  ;;  %s2348_s30 = smov 16  }
 0x2fc   : > { %1214 = vrot.lane.b32.xlu0 %v2688_v9, %s2345_s17  ;;  %s2349_s17 = smov 24  }
 0x30f   : > { %1202 = vmax.xlane.f32.xlu1 %v1201_v34 }
 0x320   : > { %1040 = vrot.lane.b32.xlu1 %v2688_v9, %s2346_s16 }
 0x367   : > { %v686_v35 = vpop.xlane.xlu1 %685 }
 0x368   : > { %v687_v36 = vsub.f32 %v681_v20, %v686_v35 }
 0x36a   : > { %v688_v37 = vmul.f32 1.442695, %v687_v36 }
 0x36b   : > { %v855_v38 = vpop.xlane.xlu0 %854  ;;  %v867_v46 = vpop.permute.xlu1 %866 }
 0x36c   : > { %2086 = vpow2.f32 %v688_v37  ;;  %v856_v39 = vsub.f32 %v850_v24, %v855_v38  ;;  %v1958_v24 = vpack.c.bf16 %v1299_v22, %v1298_v21 }
 0x36e   : > { %v857_v40 = vmul.f32 1.442695, %v856_v39  ;;  %1959 = vmatpush3.bf16.msra.mxu0 %v1958_v24 }
 0x36f   : > { %v1029_v41 = vpop.xlane.xlu0 %1028  ;;  %1960 = vmatprep.subr.bf16.mxu0 %v2333_v0 }
 0x370   : > { %2088 = vpow2.f32 %v857_v40  ;;  %v1030_v42 = vsub.f32 %v1024_v28, %v1029_v41  ;;  %v1805_v40 = vld [vmem:[#allocation6] ss:$0 sm:$0xff] }
 0x372   : > { %v1031_v43 = vmul.f32 1.442695, %v1030_v42  ;;  %1962 = vmatpush3.bf16.msra.mxu0 %v1961_v30 }
 0x373   : > { %v698_v44 = vpop.permute.xlu0 %697  ;;  %1969 = vmatprep.subr.bf16.mxu0 %v2333_v0 }
 0x374   : > { %2090 = vpow2.f32 %v1031_v43  ;;  %1876 = vmatpush3.msra.mxu1 %v698_v44 }
 0x375   : > { %1885 = vmatprep.subr.mxu1 %v2335_v1 }
 0x376   : > { %v2087_v45 = vpop.eup %2086 }
 0x377   : > { %1878 = vmatmul.mubr.msk.f32.vlgmr.msra.gmra.mrb[4].mxu1 %vm609_vm2, %v2087_v45  ;;  %v690_v51 = vsel %vm609_vm2, %v2087_v45, 0.0  ;;  %v1215_v56 = vpop.permute.xlu0 %1214 }
 0x378   : > { %1886 = vmatpush3.msra.mxu1 %v867_v46  ;;  %1887 = vmatprep.mubr.msk.f32.mxu1 %vm2334_vm0, %v2335_v1 }
 0x379   : > { %1895 = vmatprep.subr.mxu1 %v2335_v1 }
 0x37a   : > { %v2089_v47 = vpop.eup %2088 }
 0x37b   : > { %1888 = vmatmul.mubr.msk.f32.vlgmr.msra.gmra.mrb[6].mxu1 %vm609_vm2, %v2089_v47  ;;  %v859_v48 = vsel %vm609_vm2, %v2089_v47, 0.0 }
 0x37c   : > { %860 = vadd.xlane.f32.xlu1 %v859_v48  ;;  %1897 = vmatprep.mubr.msk.f32.mxu1 %vm2334_vm0, %v2335_v1 }
 0x37e   : > { %v2091_v49 = vpop.eup %2090 }
 0x37f   : > { %v1033_v50 = vsel %vm609_vm2, %v2091_v49, 0.0 }
 0x380   : > { %1034 = vadd.xlane.f32.xlu0 %v1033_v50  ;;  %691 = vadd.xlane.f32.xlu1 %v690_v51  ;;  %v1414_v51 = vld [vmem:[%s2882_s7 + $0x8] sm:$0xff] }
 0x39c   : > { %v1203_v52 = vpop.xlane.xlu1 %1202 }
 0x39d   : > { %v1204_v53 = vsub.f32 %v1198_v33, %v1203_v52 }
 0x39f   : > { %v1205_v54 = vmul.f32 1.442695, %v1204_v53  ;;  %v1416_v53 = vld [vmem:[%s2882_s7 + $0x18] sm:$0xff] }
 0x3a0   : > { %v1041_v55 = vpop.permute.xlu1 %1040 }
 0x3a1   : > { %2092 = vpow2.f32 %v1205_v54  ;;  %1896 = vmatpush3.msra.mxu1 %v1041_v55 }
 0x3a2   : > { %1898 = vmatmul.mubr.msk.f32.vlgmr.msra.gmra.mrb[8].mxu1 %vm609_vm2, %v2091_v49  ;;  %1905 = vmatprep.subr.mxu1 %v2335_v1 }
 0x3a3   : > { %1906 = vmatpush3.msra.mxu1 %v1215_v56  ;;  %1907 = vmatprep.mubr.msk.f32.mxu1 %vm2334_vm0, %v2335_v1 }
 0x3a4   : > { %1963 = vmatprep.subr.bf16.mxu1 %v2333_v0 }
 0x3ab   : > { %v2093_v57 = vpop.eup %2092 }
 0x3ac   : > { %1908 = vmatmul.mubr.msk.f32.vlgmr.msra.gmra.mrb[10].mxu1 %vm609_vm2, %v2093_v57  ;;  %v1207_v58 = vsel %vm609_vm2, %v2093_v57, 0.0 }
 0x3ad   : > { %1208 = vadd.xlane.f32.xlu0 %v1207_v58  ;;  %1929 = vmatprep.mubr.msk.f32.mxu1 %vm2334_vm0, %v2335_v1 }
 0x409   : > { %v861_v59 = vpop.xlane.xlu1 %860 }
 0x40d   : > { %v692_v60 = vpop.xlane.xlu1 %691  ;;  %v1035_v14 = vpop.xlane.xlu0 %1034 }
 0x40e   : > { %2094 = vrcp.f32 %v692_v60 }
 0x40f   : > { %2096 = vrcp.f32 %v861_v59 }
 0x410   : > { %2098 = vrcp.f32 %v1035_v14 }
 0x418   : > { %v2095_v61 = vpop.eup %2094 }
 0x419   : > { %v694_v62 = vmul.f32 %v2095_v61, %v692_v60  ;;  %v2097_v63 = vpop.eup %2096 }
 0x41a   : > { %v863_v2 = vmul.f32 %v2097_v63, %v861_v59  ;;  %v2099_v16 = vpop.eup %2098  ;;  %v1807_v59 = vld [vmem:[#allocation8] ss:$0 sm:$0xff] }
 0x41b   : > { %v695_v3 = vsub.f32 2.0, %v694_v62  ;;  %v1037_v17 = vmul.f32 %v2099_v16, %v1035_v14 }
 0x41c   : > { %v864_v4 = vsub.f32 2.0, %v863_v2  ;;  %v1524_v2 = vld [vmem:[%s2884_s9] sm:$0xff] }
 0x41d   : > { %v696_v5 = vmul.f32 %v2095_v61, %v695_v3  ;;  %v1038_v18 = vsub.f32 2.0, %v1037_v17  ;;  %v1808_v61 = vld [vmem:[#allocation9] ss:$0 sm:$0xff]  ;;  %v1525_v3 = vld [vmem:[%s2884_s9 + $0x8] sm:$0xff] }
 0x41e   : > { %v865_v10 = vmul.f32 %v2097_v63, %v864_v4  ;;  %v1970_v4 = vpack.c.bf16 %v1525_v3, %v1524_v2 }
 0x41f   : > { %v1039_v20 = vmul.f32 %v2099_v16, %v1038_v18 }
 0x43a   : > { %v1209_v15 = vpop.xlane.xlu0 %1208 }
 0x43b   : > { %2100 = vrcp.f32 %v1209_v15 }
 0x445   : > { %v2101_v19 = vpop.eup %2100 }
 0x446   : > { %v1211_v27 = vmul.f32 %v2101_v19, %v1209_v15  ;;  %v1809_v15 = vld [vmem:[#allocation11] ss:$0 sm:$0xff] }
 0x448   : > { %v1212_v31 = vsub.f32 2.0, %v1211_v27 }
 0x44a   : > { %v769_v6 = vpop.f32.mrb[4].mxu1  ;;  %v1213_v32 = vmul.f32 %v2101_v19, %v1212_v31 }
 0x44b   : > { %v773_v7 = vmul.f32 %v769_v6, %v696_v5  ;;  %v1879_v9 = vpop.f32.mrb[5].mxu1  ;;  %v1526_v5 = vld [vmem:[%s2884_s9 + $0x10] sm:$0xff]  ;;  %v1527_v6 = vld [vmem:[%s2884_s9 + $0x18] sm:$0xff] }
 0x44c   : > { %v1528_v9 = vld [vmem:[%s2884_s9 + $0x20] sm:$0xff] }
 0x44d   : > { %774 = vst.msk [vmem:[#allocation2] sm:$0xff] %vm609_vm2, %v773_v7  ;;  %v1973_v7 = vpack.c.bf16 %v1527_v6, %v1526_v5 }
 0x44e   : > { %v938_v11 = vpop.f32.mrb[6].mxu1 }
 0x44f   : > { %v942_v12 = vmul.f32 %v938_v11, %v865_v10  ;;  %v1889_v13 = vpop.f32.mrb[7].mxu1  ;;  %v1529_v10 = vld [vmem:[%s2884_s9 + $0x28] sm:$0xff] }
 0x450   : > { %v1976_v11 = vpack.c.bf16 %v1529_v10, %v1528_v9  ;;  %v1531_v13 = vld [vmem:[%s2884_s9 + $0x38] sm:$0xff] }
 0x451   : > { %944 = vrot.lane.b32.xlu0 %v942_v12, %s2347_s10  ;;  %v1530_v12 = vld [vmem:[%s2884_s9 + $0x30] sm:$0xff] }
 0x452   : > { %v1979_v14 = vpack.c.bf16 %v1531_v13, %v1530_v12 }
 0x475   : > { %v1112_v23 = vpop.f32.mrb[8].mxu1 }
 0x476   : > { %v1116_v28 = vmul.f32 %v1112_v23, %v1039_v20  ;;  %v1899_v29 = vpop.f32.mrb[9].mxu1 }
 0x478   : > { %1118 = vrot.lane.b32.xlu1 %v1116_v28, %s2348_s30  ;;  %s516_s30 = scalar_lea.vmem [#allocation12], %s1785_s19  ;;  %s2256_s19 = sshll.u32 %s2351_s14, 4  ;;  %s2257_s19 = int_to_ptr.vmem [resolvable:$false] %s2256_s19 }
 0x47f   : > { %v1286_v33 = vpop.f32.mrb[10].mxu1 }
 0x480   : > { %v1290_v34 = vmul.f32 %v1286_v33, %v1213_v32  ;;  %v1909_v35 = vpop.f32.mrb[11].mxu1 }
 0x482   : > { %1292 = vrot.lane.b32.xlu1 %v1290_v34, %s2349_s17  ;;  %s1658_s17 = sshll.u32 %s516_s30, 4  ;;  %s2832_s17 = int_to_ptr.vmem [resolvable:$true] %s1658_s17 }
 0x483   : > { %s2252_s22 = scalar_lea.vmem %s2832_s17, 128  ;;  %p2259_p3 = scmp.lt.s32.totalorder %s2832_s17, %s2257_s19 }
 0x484   : > { %p2253_p5 = scmp.ne.s32.totalorder %s2832_s17, %s2252_s22 }
 0x486   : > { %p2254_p9 = pnand %p2253_p5, %p2921_p7 }
 0x488   : > { %p2255_p4 = pneg %p2254_p9 }
 0x4c3   : > { %v945_v36 = vpop.permute.xlu0 %944 }
 0x4c4   : > { %948 = vst.msk [vmem:[#allocation2] sm:$0xff] %vm947_vm3, %v945_v36 }
 0x4ea   : > { %v1119_v37 = vpop.permute.xlu1 %1118 }
 0x4eb   : > { %1122 = vst.msk [vmem:[#allocation2] sm:$0xff] %vm1121_vm4, %v1119_v37 }
 0x4f4   : > { %v1293_v38 = vpop.permute.xlu1 %1292 }
 0x4f5   : > { %1296 = vst.msk [vmem:[#allocation2] sm:$0xff] %vm1295_vm5, %v1293_v38  ;;  %v2350_v38 = vmov -1.0  }
 0x4fc   : > { %v1297_v39 = vld [vmem:[#allocation2] sm:$0xff] }
 0x4fd   : > { %1919 = vmatmul.mubr.msk.f32.vlgmr.msra.gmra.mrb[6].mxu0 %vm532_vm1, %v1297_v39 }
 0x4fe   : > { %1948 = vmatprep.mubr.msk.f32.mxu0 %vm2334_vm0, %v2335_v1  ;;  %v1413_v1 = vld [vmem:[%s2882_s7] sm:$0xff]  ;;  %1971 = vmatpush3.bf16.msra.mxu0 %v1970_v4 }
 0x4ff   : > { %v1964_v52 = vpack.c.bf16 %v1414_v51, %v1413_v1  ;;  %1972 = vmatprep.subr.bf16.mxu0 %v2333_v0 }
 0x501   : > { %1965 = vmatpush3.bf16.msra.mxu1 %v1964_v52 }
 0x502   : > { %1966 = vmatprep.subr.bf16.mxu1 %v2333_v0  ;;  %1974 = vmatpush3.bf16.msra.mxu0 %v1973_v7 }
 0x503   : > { %1975 = vmatprep.subr.bf16.mxu0 %v2333_v0 }
 0x506   : > { %1977 = vmatpush3.bf16.msra.mxu0 %v1976_v11 }
 0x507   : > { %1978 = vmatprep.subr.bf16.mxu0 %v2333_v0 }
 0x50a   : > { %1980 = vmatpush3.bf16.msra.mxu0 %v1979_v14 }
 0x5d0   : > { %v1378_v41 = vpop.f32.mrb[6].mxu0 }
 0x5d1   : > { %v1379_v42 = vadd.f32 %v1805_v40, %v1378_v41  ;;  %v1920_v43 = vpop.f32.mrb[7].mxu0 }
 0x5d3   : > { %v1382_v44 = vadd.f32 %v1379_v42, %v2681_v8  ;;  %v1415_v8 = vld [vmem:[%s2882_s7 + $0x10] sm:$0xff] }
 0x5d4   : > { %v1967_v54 = vpack.c.bf16 %v1416_v53, %v1415_v8 }
 0x5d5   : > { %v1385_v45 = vsel %vm532_vm1, %v1382_v44, 0.0 }
 0x5d6   : > { %1386 = vadd.xlane.f32.xlu0 %v1385_v45  ;;  %1968 = vmatpush3.bf16.msra.mxu1 %v1967_v54 }
 0x663   : > { %v1387_v46 = vpop.xlane.xlu0 %1386 }
 0x664   : > { %v1389_v47 = vmul.f32 0.03125, %v1387_v46 }
 0x666   : > { %v1390_v48 = vsub.f32 %v1382_v44, %v1389_v47  ;;  %v1811_v44 = vld [vmem:[%s2917_s4] ss:$0 sm:$0xff]  ;;  %s2920_s4 = sld [smem:[#allocation23_spill]] }
 0x668   : > { %v1391_v49 = vmul.f32 %v1390_v48, %v1390_v48 }
 0x66a   : > { %v1392_v50 = vsel %vm532_vm1, %v1391_v49, 0.0 }
 0x66b   : > { %1393 = vadd.xlane.f32.xlu1 %v1392_v50 }
 0x66c   : > { %s2830_s0 = scalar_lea.hbm %s2920_s4, %s1816_s18 }
 0x6f8   : > { %v1394_v55 = vpop.xlane.xlu1 %1393 }
 0x6f9   : > { %v1395_v56 = vmul.f32 0.03125, %v1394_v55 }
 0x6fb   : > { %v1396_v57 = vadd.f32 1e-12, %v1395_v56 }
 0x6fd   : > { %2102 = vrsqrt.f32 %v1396_v57  ;;  %v1813_v57 = vld [vmem:[%s2918_s11] ss:$0 sm:$0xff]  ;;  %s2258_s11 = scalar_lea.vmem %s2257_s19, 256 }
 0x6fe   : > { %p2260_p13 = scmp.lt.s32.totalorder %s2258_s11, %s2252_s22 }
 0x700   : > { %p2261_p0 = por %p2260_p13, %p2259_p3 }
 0x702   : > { %p2262_p2 = pnand %p2261_p0, %p2255_p4 }
 0x707   : > { %v2103_v58 = vpop.eup %2102 }
 0x708   : > { %v1398_v60 = vmul.f32 %v2103_v58, %v1390_v48 }
 0x70a   : > { %v1405_v62 = vmul.f32 %v1807_v59, %v1398_v60  ;;  %v1814_v59 = vld [vmem:[%s2919_s21] ss:$0 sm:$0xff] }
 0x70c   : > { %v1412_v63 = vadd.f32 %v1808_v61, %v1405_v62 }
 0x70e   : > { %1930 = vmatmul.mubr.msk.f32.vlgmr.msra.gmra.mrb[12].mxu1 %vm532_vm1, %v1412_v63 }
 0x7e1   : > { %v1493_v16 = vpop.f32.mrb[12].mxu1 }
 0x7e2   : > { %v1494_v17 = vadd.f32 %v1809_v15, %v1493_v16  ;;  %v1931_v18 = vpop.f32.mrb[13].mxu1 }
 0x7e4   : > { %v1498_v19 = vmul.f32 0.70710677, %v1494_v17  ;;  %v1497_v41 = vmul.f32 0.5, %v1494_v17 }
 0x7e6   : > { %v1501_v20 = vand.u32 2147483647, %v1498_v19  ;;  %vm1499_vm6 = vcmp.ge.f32.partialorder %v1498_v19, 0.0 }
 0x7e7   : > { %v1500_v39 = vsel %vm1499_vm6, 1.0, %v2350_v38 }
 0x7e8   : > { %v1502_v21 = vmul.f32 0.3275911, %v1501_v20  ;;  %v1515_v0 = vsub.f32 0.0, %v1501_v20 }
 0x7ea   : > { %v1503_v22 = vadd.f32 1.0, %v1502_v21  ;;  %v1516_v24 = vmul.f32 %v1515_v0, %v1501_v20 }
 0x7ec   : > { %2104 = vrcp.f32 %v1503_v22  ;;  %v1517_v27 = vmul.f32 1.442695, %v1516_v24 }
 0x7ee   : > { %2106 = vpow2.f32 %v1517_v27 }
 0x7f6   : > { %v2105_v23 = vpop.eup %2104 }
 0x7f7   : > { %v1506_v25 = vmul.f32 1.0614054, %v2105_v23 }
 0x7f8   : > { %v2107_v35 = vpop.eup %2106 }
 0x7f9   : > { %v1507_v26 = vadd.f32 -1.4531521, %v1506_v25 }
 0x7fb   : > { %v1508_v28 = vmul.f32 %v2105_v23, %v1507_v26 }
 0x7fd   : > { %v1509_v29 = vadd.f32 1.4214138, %v1508_v28 }
 0x7ff   : > { %v1510_v30 = vmul.f32 %v2105_v23, %v1509_v29 }
 0x801   : > { %v1511_v31 = vadd.f32 -0.28449672, %v1510_v30 }
 0x803   : > { %v1512_v32 = vmul.f32 %v2105_v23, %v1511_v31 }
 0x805   : > { %v1513_v33 = vadd.f32 0.2548296, %v1512_v32 }
 0x807   : > { %v1514_v34 = vmul.f32 %v2105_v23, %v1513_v33 }
 0x809   : > { %v1519_v36 = vmul.f32 %v2107_v35, %v1514_v34 }
 0x80b   : > { %v1520_v37 = vsub.f32 1.0, %v1519_v36 }
 0x80d   : > { %v1521_v40 = vmul.f32 %v1520_v37, %v1500_v39 }
 0x80f   : > { %v1522_v42 = vadd.f32 1.0, %v1521_v40 }
 0x811   : > { %v1523_v43 = vmul.f32 %v1522_v42, %v1497_v41 }
 0x813   : > { %1949 = vmatmul.mubr.msk.f32.vlgmr.msra.gmra.mrb[8].mxu0 %vm1539_vm7, %v1523_v43 }
 0x8e6   : > { %v1609_v45 = vpop.f32.mrb[8].mxu0 }
 0x8e7   : > { %v1610_v46 = vadd.f32 %v1811_v44, %v1609_v45  ;;  %v1950_v47 = vpop.f32.mrb[9].mxu0 }
 0x8e9   : > { %v1613_v48 = vadd.f32 %v1610_v46, %v1412_v63 }
 0x8eb   : > { %v1616_v49 = vsel %vm532_vm1, %v1613_v48, 0.0 }
 0x8ec   : > { %1617 = vadd.xlane.f32.xlu0 %v1616_v49 }
 0x979   : > { %v1618_v50 = vpop.xlane.xlu0 %1617 }
 0x97a   : > { %v1619_v1 = vmul.f32 0.03125, %v1618_v50 }
 0x97c   : > { %v1620_v51 = vsub.f32 %v1613_v48, %v1619_v1 }
 0x97e   : > { %v1621_v52 = vmul.f32 %v1620_v51, %v1620_v51 }
 0x980   : > { %v1622_v8 = vsel %vm532_vm1, %v1621_v52, 0.0 }
 0x981   : > { %1623 = vadd.xlane.f32.xlu0 %v1622_v8 }
 0xa0e   : > { %v1624_v53 = vpop.xlane.xlu0 %1623 }
 0xa0f   : > { %v1625_v54 = vmul.f32 0.03125, %v1624_v53 }
 0xa11   : > { %v1626_v55 = vadd.f32 1e-12, %v1625_v54 }
 0xa13   : > { %2108 = vrsqrt.f32 %v1626_v55 }
 0xa1d   : > { %v2109_v56 = vpop.eup %2108 }
 0xa1e   : > { %v1628_v58 = vmul.f32 %v2109_v56, %v1620_v51 }
 0xa20   : > { %v1635_v60 = vmul.f32 %v1813_v57, %v1628_v58 }
 0xa22   : > { %v1642_v61 = vadd.f32 %v1814_v59, %v1635_v60 }
 0xa24   : > { %1643 = vst.msk [vmem:[%s516_s30] sm:$0xff] %vm532_vm1, %v1642_v61 }
 0xa25   : > { %2265 = shalt.err (!%p2262_p2)
}
 0xa26   : > { %s2266_s5 = scalar_lea.hbm %s2830_s0, 128  ;;  %s2270_s21 = scalar_lea.hbm %s2920_s4, 256 }
 0xa27   : > { %p2267_p8 = scmp.ne.s32.totalorder %s2830_s0, %s2266_s5  ;;  %p2271_p12 = scmp.lt.u32.totalorder %s2830_s0, %s2920_s4 }
 0xa28   : > { %p2272_p1 = scmp.lt.u32.totalorder %s2270_s21, %s2266_s5  ;;  %p2274_p5 = scmp.lt.u32.totalorder %s2266_s5, %s2830_s0 }
 0xa29   : > { %p2268_p10 = pnand %p2267_p8, %p2921_p7 }
 0xa2a   : > { %p2273_p6 = por %p2272_p1, %p2271_p12 }
 0xa2b   : > { %p2269_p11 = pneg %p2268_p10 }
 0xa2c   : > { %p2275_p9 = por %p2274_p5, %p2273_p6 }
 0xa2e   : > { %p2276_p4 = pnand %p2275_p9, %p2269_p11 }
 0xa30   : > { %2279 = shalt.err (!%p2276_p4)
}
 0xa31   : > { %1999 = dma.vmem_to_hbm [thread:$0]  (%p2921_p7), %s2832_s17, 128, %s2830_s0, %s1645_s15  }
 0xa32 PF: > { %s1670_s16 = sand.u32 1, %s2314_s25   ;;  %p2922_p3 = scmp.ne.s32.totalorder %s2909_s23, 0 }
 0xa33   : > { %p2923_p13 = scmp.ge.s32.totalorder %s2326_s28, 2  ;;  %s1671_s10 = scalar_lea.sflag [#allocation5], %s1670_s16 }
 0xa35   : > { %p2019_p0 = pnand %p2923_p13, %p2922_p3 }
 0xa37   : > { %2309 = dma.done.wait (!%p2019_p0), %s1671_s10, 128  }
 0xa38   : > { %2311 = vsyncadd (!%p2019_p0), %s1671_s10, 4294967168  ;;  %p28_p2 = scmp.ge.s32.totalorder %s2568_s20, 4   ;;  %s2924_s25 = smov %s2318_s26 }
 0xa39   : > { %s2925_s26 = smov %s2322_s27  ;;  %s2926_s27 = smov %s2579_s29 }
 0xa3a   : > { %s2927_s28 = smov %s2568_s20  ;;  %30 = sbr.rel (!%p28_p2) target bundleno = 15 (0xf), region = 136 }
 0xa41   :  { %1676 = vsyncpa [#allocation4], 1 }
 0xa42   :  { %1678 = vsyncpa [#allocation4 + $0x1], 1 }
 0xa43   :  { %1679 = vsyncpa [#allocation7], 1 }
 0xa44   :  { %1680 = vsyncpa [#allocation10], 1 }
 0xa45   :  { %1681 = vsyncpa [#allocation5], 1 }
 0xa46   :  { %1683 = vsyncpa [#allocation5 + $0x1], 1 }

// kernel: tpu_custom_call.1
= control target key start
LH: loop header
LB: loop body
LE: loop exit
PB: predicated region body
PF: predicated region fallthrough
CT: control target
= control target key end

     0   :  { %s2875_s0 = inlined_call_operand.hbm [shape: f32[2,8,32], index: 0, kind: input, shape index: {}]   ;;  %s2876_s1 = inlined_call_operand.vmem [shape: f32[2,1,8], index: 1, kind: input, shape index: {}]   ;;  %s2877_s2 = inlined_call_operand.vmem [shape: f32[32,96], index: 2, kind: input, shape index: {}]   ;;  %s2878_s3 = inlined_call_operand.vmem [shape: f32[32,32], index: 3, kind: input, shape index: {}]   ;;  %s2879_s4 = inlined_call_operand.hbm [shape: f32[1,32], index: 4, kind: input, shape index: {}]   ;;  %s2880_s5 = inlined_call_operand.hbm [shape: f32[1,32], index: 5, kind: input, shape index: {}]   ;;  %s2881_s6 = inlined_call_operand.hbm [shape: f32[1,32], index: 6, kind: input, shape index: {}]   ;;  %s2882_s7 = inlined_call_operand.vmem [shape: f32[32,64], index: 7, kind: input, shape index: {}]   ;;  %s2883_s8 = inlined_call_operand.hbm [shape: f32[1,64], index: 8, kind: input, shape index: {}]   ;;  %s2884_s9 = inlined_call_operand.vmem [shape: f32[64,32], index: 9, kind: input, shape index: {}]   ;;  %s2885_s10 = inlined_call_operand.vmem [shape: f32[1,32], index: 10, kind: input, shape index: {}]   ;;  %s2886_s11 = inlined_call_operand.vmem [shape: f32[1,32], index: 11, kind: input, shape index: {}]   ;;  %s2887_s12 = inlined_call_operand.vmem [shape: f32[1,32], index: 12, kind: input, shape index: {}]   ;;  %s2888_s13 = inlined_call_operand.hbm [shape: f32[2,8,32], index: 13, kind: output, shape index: {}]  }
   0x1   :  { %2893 = sst [smem:[#allocation17_spill]] %s2875_s0 }
   0x2   :  { %2894 = sst [smem:[#allocation18_spill]] %s2879_s4 }
   0x3   :  { %2895 = sst [smem:[#allocation19_spill]] %s2880_s5 }
   0x4   :  { %2896 = sst [smem:[#allocation20_spill]] %s2885_s10 }
   0x5   :  { %2897 = sst [smem:[#allocation21_spill]] %s2886_s11 }
   0x6   :  { %2898 = sst [smem:[#allocation22_spill]] %s2887_s12 }
   0x7   :  { %2899 = sst [smem:[#allocation23_spill]] %s2888_s13 }
   0x8   :  { %18 = vsyncpa [#allocation4], 0 }
   0x9   :  { %20 = vsyncpa [#allocation4 + $0x1], 0 }
   0xa   :  { %21 = vsyncpa [#allocation7], 0 }
   0xb   :  { %22 = vsyncpa [#allocation10], 0 }
   0xc   :  { %23 = vsyncpa [#allocation5], 0 }
   0xd   :  { %25 = vsyncpa [#allocation5 + $0x1], 0  ;;  %s2422_s25 = smov 0   ;;  %s2424_s26 = smov 0  }
   0xe   :  { %s2426_s27 = smov 0   ;;  %s2428_s28 = smov 0  }
   0xf LB: > { %s2328_s29 = smov [#allocation6]   ;;  %s2443_s14 = sadd.s32 4294967295, %s2326_s28   ;;  %s2326_s28 = sphi %s2428_s28, %s2927_s28   ;;  %s2322_s27 = sphi %s2426_s27, %s2926_s27   ;;  %s2318_s26 = sphi %s2424_s26, %s2925_s26   ;;  %s2314_s25 = sphi %s2422_s25, %s2924_s25  }
  0x10   : > { %s364_s30 = sshll.u32 %s2328_s29, 4  ;;  %p1776_p0 = scmp.ge.s32.totalorder %s2326_s28, 1  ;;  %s2448_s30 = int_to_ptr.vmem [resolvable:$true] %s364_s30 }
  0x11   : > { %p2890_p1 = scmp.eq.s32.totalorder %s2443_s14, 0  ;;  %p345_p2 = scmp.lt.s32.totalorder %s2326_s28, 3 }
  0x12   : > { %s2329_s16 = smov [#allocation9]   ;;  %s2330_s18 = smov [#allocation8]  }
  0x13   : > { %p2450_p3 = pnand %p1776_p0, %p345_p2  ;;  %s386_s17 = sshll.u32 %s2329_s16, 4  ;;  %s2457_s17 = int_to_ptr.vmem [resolvable:$true] %s386_s17 }
  0x14   : > { %s375_s19 = sshll.u32 %s2330_s18, 4  ;;  %s2331_s21 = smov [#allocation11]   ;;  %s2465_s19 = int_to_ptr.vmem [resolvable:$true] %s375_s19 }
  0x15   : > { %s2900_s15 = scalar_select %p2450_p3, 1, 0 }
  0x16   : > { %p2001_p5 = pneg %p2450_p3  ;;  %s2467_s22 = sshll.u32 %s2331_s21, 4  ;;  %s401_s22 = int_to_ptr.vmem [resolvable:$true] %s2467_s22 }
  0x17   : > { %s2902_s4 = sld [smem:[#allocation18_spill]] }
  0x18   : > { %p2461_p6 = pnand %p2001_p5, %p2890_p1 }
  0x1a   : > { %p2477_p8 = pneg %p2461_p6 }
  0x1d   : > { %s2110_s29 = scalar_lea.hbm %s2902_s4, 16 }
  0x1e   : > { %p2111_p7 = scmp.ne.s32.totalorder %s2902_s4, %s2110_s29  ;;  %p2117_p11 = scmp.lt.u32.totalorder %s2110_s29, %s2902_s4 }
  0x20   : > { %p2113_p9 = pnand %p2477_p8, %p2111_p7 }
  0x22   : > { %p2114_p10 = pneg %p2113_p9 }
  0x24   : > { %p2119_p12 = pnand %p2117_p11, %p2114_p10 }
  0x26   : > { %2122 = shalt.err (!%p2119_p12)
}
  0x27   : > { %s2123_s13 = scalar_lea.vmem %s2448_s30, 16  ;;  %s2130_s23 = scalar_lea.vmem %s2448_s30, 32 }
  0x28   : > { %p2124_p13 = scmp.ne.s32.totalorder %s2448_s30, %s2123_s13  ;;  %p2131_p5 = scmp.lt.s32.totalorder %s2448_s30, %s2448_s30 }
  0x29   : > { %p2132_p7 = scmp.lt.s32.totalorder %s2130_s23, %s2123_s13 }
  0x2a   : > { %p2126_p0 = pnand %p2124_p13, %p2477_p8 }
  0x2b   : > { %p2133_p9 = por %p2132_p7, %p2131_p5 }
  0x2c   : > { %p2127_p2 = pneg %p2126_p0 }
  0x2e   : > { %p2134_p4 = pnand %p2133_p9, %p2127_p2 }
  0x30   : > { %2137 = shalt.err (!%p2134_p4)
}
  0x31   : > { %2004 = dma.hbm_to_vmem [thread:$0]  (!%p2461_p6), %s2902_s4, 16, %s2448_s30, [#allocation7]  }
  0x32   : > { %s2138_s21 = scalar_lea.hbm %s2881_s6, 16 }
  0x33   : > { %p2139_p10 = scmp.ne.s32.totalorder %s2881_s6, %s2138_s21  ;;  %p2145_p4 = scmp.lt.u32.totalorder %s2138_s21, %s2881_s6 }
  0x35   : > { %p2141_p11 = pnand %p2139_p10, %p2477_p8 }
  0x37   : > { %p2142_p12 = pneg %p2141_p11 }
  0x39   : > { %p2147_p13 = pnand %p2145_p4, %p2142_p12 }
  0x3b   : > { %2150 = shalt.err (!%p2147_p13)
}
  0x3c   : > { %s2151_s30 = scalar_lea.vmem %s2457_s17, 16  ;;  %s2158_s10 = scalar_lea.vmem %s2457_s17, 32 }
  0x3d   : > { %p2152_p0 = scmp.ne.s32.totalorder %s2457_s17, %s2151_s30  ;;  %p2159_p7 = scmp.lt.s32.totalorder %s2457_s17, %s2457_s17 }
  0x3e   : > { %p2160_p9 = scmp.lt.s32.totalorder %s2158_s10, %s2151_s30 }
  0x3f   : > { %p2154_p2 = pnand %p2152_p0, %p2477_p8 }
  0x40   : > { %p2161_p10 = por %p2160_p9, %p2159_p7 }
  0x41   : > { %p2155_p5 = pneg %p2154_p2 }
  0x43   : > { %p2162_p11 = pnand %p2161_p10, %p2155_p5 }
  0x45   : > { %2165 = shalt.err (!%p2162_p11)
}
  0x46   : > { %2010 = dma.hbm_to_vmem [thread:$0]  (!%p2461_p6), %s2881_s6, 16, %s2457_s17, [#allocation10]  }
  0x47   : > { %s2904_s5 = sld [smem:[#allocation19_spill]] }
  0x4d   : > { %s2166_s16 = scalar_lea.hbm %s2904_s5, 16 }
  0x4e   : > { %p2167_p12 = scmp.ne.s32.totalorder %s2904_s5, %s2166_s16  ;;  %p2173_p0 = scmp.lt.u32.totalorder %s2166_s16, %s2904_s5 }
  0x50   : > { %p2169_p4 = pnand %p2167_p12, %p2477_p8 }
  0x52   : > { %p2170_p13 = pneg %p2169_p4 }
  0x54   : > { %p2175_p2 = pnand %p2173_p0, %p2170_p13 }
  0x56   : > { %2178 = shalt.err (!%p2175_p2)
}
  0x57   : > { %s2179_s17 = scalar_lea.vmem %s2465_s19, 16  ;;  %s2186_s10 = scalar_lea.vmem %s2465_s19, 32 }
  0x58   : > { %p2180_p5 = scmp.ne.s32.totalorder %s2465_s19, %s2179_s17  ;;  %p2187_p10 = scmp.lt.s32.totalorder %s2465_s19, %s2465_s19 }
  0x59   : > { %p2188_p11 = scmp.lt.s32.totalorder %s2186_s10, %s2179_s17 }
  0x5a   : > { %p2182_p7 = pnand %p2180_p5, %p2477_p8 }
  0x5b   : > { %p2189_p12 = por %p2188_p11, %p2187_p10 }
  0x5c   : > { %p2183_p9 = pneg %p2182_p7 }
  0x5e   : > { %p2190_p4 = pnand %p2189_p12, %p2183_p9 }
  0x60   : > { %2193 = shalt.err (!%p2190_p4)
}
  0x61   : > { %2007 = dma.hbm_to_vmem [thread:$0]  (!%p2461_p6), %s2904_s5, 16, %s2465_s19, [#allocation7]  }
  0x62   : > { %s2194_s16 = scalar_lea.hbm %s2883_s8, 16 }
  0x63   : > { %p2195_p13 = scmp.ne.s32.totalorder %s2883_s8, %s2194_s16  ;;  %p2201_p5 = scmp.lt.u32.totalorder %s2194_s16, %s2883_s8 }
  0x65   : > { %p2197_p0 = pnand %p2195_p13, %p2477_p8 }
  0x67   : > { %p2198_p2 = pneg %p2197_p0 }
  0x69   : > { %p2203_p7 = pnand %p2201_p5, %p2198_p2 }
  0x6b   : > { %2206 = shalt.err (!%p2203_p7)
}
  0x6c   : > { %s2207_s17 = scalar_lea.vmem %s401_s22, 16  ;;  %s2214_s19 = scalar_lea.vmem %s401_s22, 32 }
  0x6d   : > { %p2208_p9 = scmp.ne.s32.totalorder %s401_s22, %s2207_s17  ;;  %p2215_p12 = scmp.lt.s32.totalorder %s401_s22, %s401_s22 }
  0x6e   : > { %p2216_p4 = scmp.lt.s32.totalorder %s2214_s19, %s2207_s17 }
  0x6f   : > { %p2210_p10 = pnand %p2208_p9, %p2477_p8 }
  0x70   : > { %p2217_p1 = por %p2216_p4, %p2215_p12 }
  0x71   : > { %p2211_p11 = pneg %p2210_p10 }
  0x73   : > { %p2218_p3 = pnand %p2217_p1, %p2211_p11 }
  0x75   : > { %2221 = shalt.err (!%p2218_p3)
}
  0x76   : > { %2013 = dma.hbm_to_vmem [thread:$0]  (!%p2461_p6), %s2883_s8, 16, %s401_s22, [#allocation10]  }
  0x77   : > { %s1775_s18 = sadd.s32 4294967294, %s2326_s28   ;;  %s2568_s20 = sadd.s32 1, %s2326_s28  }
  0x78   : > { %s35_s12 = ssub.s32 %s2326_s28, %s2568_s20  ;;  %s38_s24 = sadd.s32 1, %s2322_s27 }
  0x79   : > { %p36_p1 = scmp.eq.s32.totalorder %s35_s12, 0  ;;  %p45_p3 = scmp.ne.s32.totalorder %s2322_s27, %s2318_s26 }
  0x7a   : > { %p46_p8 = scmp.eq.s32.totalorder %s2326_s28, 0  ;;  %p51_p13 = scmp.ne.s32.totalorder %s2318_s26, %s2314_s25 }
  0x7b   : > { %s2579_s29 = scalar_select %p36_p1, %s2322_s27, %s38_s24  }
  0x7c   : > { %p2581_p0 = por %p46_p8, %p45_p3  ;;  %p2906_p2 = scmp.eq.s32.totalorder %s2443_s14, 0 }
  0x7d   : > { %p332_p5 = scmp.eq.s32.totalorder %s2443_s14, 1  ;;  %p338_p7 = scmp.eq.s32.totalorder %s1775_s18, 1 }
  0x7e   : > { %p2587_p6 = por %p2906_p2, %p51_p13  ;;  %p2026_p9 = scmp.lt.s32.totalorder %s2326_s28, 2 }
  0x7f   : > { %s423_s21 = sand.u32 1, %s2322_s27   ;;  %p2594_p10 = por %p332_p5, %p45_p3 }
  0x80   : > { %p2598_p11 = por %p338_p7, %p51_p13  ;;  %s1782_s30 = sshll.u32 %s423_s21, 3 }
  0x81   : > { %s2908_s13 = scalar_select %p2594_p10, 1, 0 }
  0x82   : > { %s2909_s23 = scalar_select %p2598_p11, 1, 0 }
  0x83   : > { %s1783_s17 = sshll.u32 %s2326_s28, 7  ;;  %s2910_s0 = sld [smem:[#allocation17_spill]] }
  0x84   : > { %s427_s18 = scalar_lea.vmem [#allocation3], %s1782_s30  ;;  %p2612_p12 = pnand %p2026_p9, %p2581_p0 }
  0x85   : > { %s434_s12 = sshll.u32 %s427_s18, 4  ;;  %s424_s4 = scalar_lea.sflag [#allocation4], %s423_s21  ;;  %s2608_s12 = int_to_ptr.vmem [resolvable:$true] %s434_s12 }
  0x86   : > { %p2224_p1 = pneg %p2612_p12 }
  0x89   : > { %s2606_s11 = scalar_lea.hbm %s2910_s0, %s1783_s17  ;;  %s2227_s19 = scalar_lea.hbm %s2910_s0, 256 }
  0x8a   : > { %s2222_s5 = scalar_lea.hbm %s2606_s11, 128  ;;  %p2228_p13 = scmp.lt.u32.totalorder %s2606_s11, %s2910_s0 }
  0x8b   : > { %p2223_p4 = scmp.ne.s32.totalorder %s2606_s11, %s2222_s5  ;;  %p2229_p0 = scmp.lt.u32.totalorder %s2227_s19, %s2222_s5 }
  0x8c   : > { %p2231_p5 = scmp.lt.u32.totalorder %s2222_s5, %s2606_s11 }
  0x8d   : > { %p2225_p3 = pnand %p2224_p1, %p2223_p4  ;;  %p2230_p2 = por %p2229_p0, %p2228_p13 }
  0x8f   : > { %p2226_p8 = pneg %p2225_p3  ;;  %p2232_p7 = por %p2231_p5, %p2230_p2 }
  0x91   : > { %p2233_p9 = pnand %p2232_p7, %p2226_p8 }
  0x93   : > { %2236 = shalt.err (!%p2233_p9)
}
  0x94   : > { %s2237_s21 = scalar_lea.vmem %s2608_s12, 128  ;;  %s2332_s18 = smov [#allocation3]  }
  0x95   : > { %p2238_p4 = scmp.ne.s32.totalorder %s2608_s12, %s2237_s21  ;;  %s2242_s30 = sshll.u32 %s2332_s18, 4  ;;  %s2243_s30 = int_to_ptr.vmem [resolvable:$false] %s2242_s30 }
  0x96   : > { %s2244_s17 = scalar_lea.vmem %s2243_s30, 256  ;;  %p2245_p10 = scmp.lt.s32.totalorder %s2608_s12, %s2243_s30 }
  0x97   : > { %p2240_p3 = pnand %p2238_p4, %p2224_p1  ;;  %p2246_p13 = scmp.lt.s32.totalorder %s2244_s17, %s2237_s21 }
  0x99   : > { %p2241_p11 = pneg %p2240_p3  ;;  %p2247_p0 = por %p2246_p13, %p2245_p10 }
  0x9b   : > { %p2248_p2 = pnand %p2247_p0, %p2241_p11 }
  0x9d   : > { %2251 = shalt.err (!%p2248_p2)
}
  0x9e   : > { %2017 = dma.hbm_to_vmem [thread:$0]  (!%p2612_p12), %s2606_s11, 128, %s2608_s12, %s424_s4  }
  0x9f   : > { %p2912_p8 = scmp.ne.s32.totalorder %s2900_s15, 0 }
  0xa0   : > { %s2644_s5 = sand.u32 (!%p2912_p8), 1, %s2318_s26  }
  0xa1   : > { %449 = sbr.rel (%p2912_p8) target bundleno = 2610 (0xa32), region = 72  ;;  %s1785_s19 = sshll.u32 (!%p2912_p8), %s2644_s5, 3 }
  0xa2   : > { %s452_s16 = scalar_lea.sflag (!%p2912_p8), [#allocation4], %s2644_s5  ;;  %s455_s10 = scalar_lea.vmem (!%p2912_p8), [#allocation3], %s1785_s19 }
  0xa8   : > { %2297 = dma.done.wait (%p2587_p6), %s452_s16, 128  }
  0xa9   : > { %2299 = vsyncadd (%p2587_p6), %s452_s16, 4294967168  ;;  %p2913_p10 = scmp.eq.s32.totalorder %s2443_s14, 0 }
  0xab   : > { %2301 = dma.done.wait (%p2913_p10), [#allocation7], 32   ;;  %p2914_p11 = pmov %p2913_p10 }
  0xac   : > { %p2915_p12 = pmov %p2913_p10 }
  0xad   : > { %2303 = vsyncadd (%p2914_p11), [#allocation7], 4294967264 }
  0xae   : > { %2305 = dma.done.wait (%p2915_p12), [#allocation10], 32   ;;  %p2916_p1 = pmov %p2913_p10 }
  0xaf   : > { %v2333_v0 = vmov 0.0|0.0   ;;  %vm2334_vm0 = vmmov 0   ;;  %v2335_v1 = vmov 0.0   ;;  %v528_v2 = vld [vmem:[%s2877_s2] sm:$0xff]  ;;  %v529_v3 = vld [vmem:[%s2877_s2 + $0x8] sm:$0xff]  ;;  %v530_v4 = vld [vmem:[%s2877_s2 + $0x10] sm:$0xff] }
  0xb0   : > { %2307 = vsyncadd (%p2916_p1), [#allocation10], 4294967264  ;;  %1951 = vmatprep.subr.bf16.mxu1 %v2333_v0  ;;  %1867 = vmatprep.mubr.msk.f32.mxu1 %vm2334_vm0, %v2335_v1  ;;  %v1952_v5 = vpack.c.bf16 %v529_v3, %v528_v2  ;;  %v531_v6 = vld [vmem:[%s2877_s2 + $0x18] sm:$0xff]  ;;  %v2681_v8 = vld [vmem:[%s455_s10] sm:$0xff]  ;;  %vm532_vm1 = vcmask 261120   ;;  %s2336_s30 = smov 120  }
  0xb1   : > { %1880 = vmatprep.subr.mxu0 %v2335_v1  ;;  %1882 = vmatprep.mubr.msk.f32.mxu0 %vm2334_vm0, %v2335_v1  ;;  %v1955_v7 = vpack.c.bf16 %v531_v6, %v530_v4  ;;  %s2337_s17 = smov 96   ;;  %s2338_s16 = smov 80   ;;  %vm609_vm2 = vcmask 64512   ;;  %vm947_vm3 = vcmask 130112   ;;  %vm1121_vm4 = vcmask 195712  }
  0xb2   : > { %1953 = vmatpush3.bf16.msra.mxu1 %v1952_v5  ;;  %s2339_s10 = smov 88   ;;  %s2340_s4 = smov 72   ;;  %vm1295_vm5 = vcmask 261312   ;;  %vm1539_vm7 = vcmask 523264  }
  0xb3   : > { %1954 = vmatprep.subr.bf16.mxu1 %v2333_v0  ;;  %s2341_s15 = smov 112   ;;  %s2342_s22 = smov 104  }
  0xb4   : > { %p517_p6 = scmp.lt.s32.totalorder %s2443_s14, 1  ;;  %s2343_s18 = smov 56  }
  0xb5   : > { %p2921_p7 = scmp.ne.s32.totalorder %s2908_s13, 0 }
  0xb6   : > { %1956 = vmatpush3.bf16.msra.mxu1 %v1955_v7  ;;  %s518_s11 = scalar_select %p517_p6, %s2443_s14, 1 }
  0xb7   : > { %1870 = vmatprep.subr.mxu1 %v2335_v1 }
  0xb8   : > { %s519_s21 = scalar_lea.vmem %s2876_s1, %s518_s11  ;;  %s2918_s11 = sld [smem:[#allocation21_spill]] }
  0xb9   : > { %1868 = vmatmul.mubr.msk.f32.vlgmr.msra.gmra.mrb[0].mxu1 %vm532_vm1, %v2681_v8  ;;  %v1791_v18 = vld [vmem:[%s519_s21] ss:$0 sm:$0xff]  ;;  %s2919_s21 = sld [smem:[#allocation22_spill]] }
  0xba   : > { %1872 = vmatprep.mubr.msk.f32.mxu1 %vm2334_vm0, %v2335_v1 }
 0x18c   : > { %v2688_v9 = vpop.f32.mrb[0].mxu1 }
 0x18d   : > { %775 = vrot.lane.b32.xlu1 %v2688_v9, %s2336_s30  ;;  %607 = vrot.lane.b32.xlu0 %v2688_v9, %s2337_s17  ;;  %v1869_v10 = vpop.f32.mrb[1].mxu1  ;;  %s2344_s30 = smov 64   ;;  %s2345_s17 = smov 40  }
 0x191   : > { %951 = vrot.lane.b32.xlu1 %v2688_v9, %s2338_s16  ;;  %777 = vrot.lane.b32.xlu0 %v2688_v9, %s2339_s10  ;;  %s2346_s16 = smov 48   ;;  %s2347_s10 = smov 8  }
 0x195   : > { %1125 = vrot.lane.b32.xlu1 %v2688_v9, %s2340_s4  ;;  %949 = vrot.lane.b32.xlu0 %v2688_v9, %s2341_s15  ;;  %s2917_s4 = sld [smem:[#allocation20_spill]]  ;;  %s1645_s15 = scalar_lea.sflag [#allocation5], %s2644_s5 }
 0x199   : > { %1123 = vrot.lane.b32.xlu0 %v2688_v9, %s2342_s22 }
 0x1ff   : > { %v776_v11 = vpop.permute.xlu1 %775  ;;  %v608_v12 = vpop.permute.xlu0 %607 }
 0x200   : > { %1871 = vmatpush3.xpose.msk.msra.mxu1 %vm609_vm2, %v608_v12 }
 0x201   : > { %1875 = vmatprep.subr.mxu1 %v2335_v1 }
 0x203   : > { %1873 = vmatmul.mubr.msk.f32.vlgmr.msra.gmra.mrb[2].mxu1 %vm609_vm2, %v2688_v9  ;;  %v778_v13 = vpop.permute.xlu0 %777  ;;  %v952_v14 = vpop.permute.xlu1 %951 }
 0x204   : > { %1881 = vmatpush3.xpose.msk.msra.mxu0 %vm609_vm2, %v778_v13  ;;  %1877 = vmatprep.mubr.msk.f32.mxu1 %vm2334_vm0, %v2335_v1 }
 0x205   : > { %1890 = vmatprep.subr.mxu0 %v2335_v1 }
 0x207   : > { %1883 = vmatmul.mubr.msk.f32.vlgmr.msra.gmra.mrb[0].mxu0 %vm609_vm2, %v776_v11  ;;  %v950_v15 = vpop.permute.xlu0 %949  ;;  %v1126_v16 = vpop.permute.xlu1 %1125 }
 0x208   : > { %1891 = vmatpush3.xpose.msk.msra.mxu0 %vm609_vm2, %v952_v14  ;;  %1892 = vmatprep.mubr.msk.f32.mxu0 %vm2334_vm0, %v2335_v1 }
 0x209   : > { %1900 = vmatprep.subr.mxu0 %v2335_v1 }
 0x20b   : > { %1893 = vmatmul.mubr.msk.f32.vlgmr.msra.gmra.mrb[2].mxu0 %vm609_vm2, %v950_v15  ;;  %v1124_v17 = vpop.permute.xlu0 %1123 }
 0x20c   : > { %1901 = vmatpush3.xpose.msk.msra.mxu0 %vm609_vm2, %v1126_v16  ;;  %1902 = vmatprep.mubr.msk.f32.mxu0 %vm2334_vm0, %v2335_v1 }
 0x20d   : > { %1957 = vmatprep.subr.bf16.mxu0 %v2333_v0 }
 0x20f   : > { %1903 = vmatmul.mubr.msk.f32.vlgmr.msra.gmra.mrb[4].mxu0 %vm609_vm2, %v1124_v17 }
 0x210   : > { %1918 = vmatprep.mubr.msk.f32.mxu0 %vm2334_vm0, %v2335_v1 }
 0x2d6   : > { %v680_v19 = vpop.f32.mrb[2].mxu1 }
 0x2d7   : > { %v681_v20 = vadd.f32 %v1791_v18, %v680_v19  ;;  %v1874_v21 = vpop.f32.mrb[3].mxu1 }
 0x2d8   : > { %v1298_v21 = vld [vmem:[%s2878_s3] sm:$0xff] }
 0x2d9   : > { %v684_v22 = vsel %vm609_vm2, %v681_v20, -inf }
 0x2da   : > { %v849_v23 = vpop.f32.mrb[0].mxu0  ;;  %685 = vmax.xlane.f32.xlu1 %v684_v22  ;;  %v1299_v22 = vld [vmem:[%s2878_s3 + $0x8] sm:$0xff] }
 0x2db   : > { %v850_v24 = vadd.f32 %v1791_v18, %v849_v23  ;;  %v1884_v25 = vpop.f32.mrb[1].mxu0 }
 0x2dc   : > { %v1300_v25 = vld [vmem:[%s2878_s3 + $0x10] sm:$0xff] }
 0x2dd   : > { %v853_v26 = vsel %vm609_vm2, %v850_v24, -inf }
 0x2de   : > { %854 = vmax.xlane.f32.xlu0 %v853_v26  ;;  %v1023_v27 = vpop.f32.mrb[2].mxu0  ;;  %v1301_v26 = vld [vmem:[%s2878_s3 + $0x18] sm:$0xff] }
 0x2df   : > { %v1024_v28 = vadd.f32 %v1791_v18, %v1023_v27  ;;  %v1894_v29 = vpop.f32.mrb[3].mxu0 }
 0x2e1   : > { %v1027_v30 = vsel %vm609_vm2, %v1024_v28, -inf }
 0x2e2   : > { %1028 = vmax.xlane.f32.xlu0 %v1027_v30  ;;  %v1197_v31 = vpop.f32.mrb[4].mxu0  ;;  %v1961_v30 = vpack.c.bf16 %v1301_v26, %v1300_v25 }
 0x2e3   : > { %v1904_v32 = vpop.f32.mrb[5].mxu0  ;;  %v1198_v33 = vadd.f32 %v1791_v18, %v1197_v31 }
 0x2e5   : > { %v1201_v34 = vsel %vm609_vm2, %v1198_v33, -inf }
 0x2eb   : > { %866 = vrot.lane.b32.xlu1 %v2688_v9, %s2343_s18  ;;  %s1816_s18 = sshll.u32 %s2443_s14, 7  ;;  %s2351_s14 = smov [#allocation12]  }
 0x2f8   : > { %697 = vrot.lane.b32.xlu0 %v2688_v9, %s2344_s30  ;;  %s2348_s30 = smov 16  }
 0x2fc   : > { %1214 = vrot.lane.b32.xlu0 %v2688_v9, %s2345_s17  ;;  %s2349_s17 = smov 24  }
 0x30f   : > { %1202 = vmax.xlane.f32.xlu1 %v1201_v34 }
 0x320   : > { %1040 = vrot.lane.b32.xlu1 %v2688_v9, %s2346_s16 }
 0x367   : > { %v686_v35 = vpop.xlane.xlu1 %685 }
 0x368   : > { %v687_v36 = vsub.f32 %v681_v20, %v686_v35 }
 0x36a   : > { %v688_v37 = vmul.f32 1.442695, %v687_v36 }
 0x36b   : > { %v855_v38 = vpop.xlane.xlu0 %854  ;;  %v867_v46 = vpop.permute.xlu1 %866 }
 0x36c   : > { %2086 = vpow2.f32 %v688_v37  ;;  %v856_v39 = vsub.f32 %v850_v24, %v855_v38  ;;  %v1958_v24 = vpack.c.bf16 %v1299_v22, %v1298_v21 }
 0x36e   : > { %v857_v40 = vmul.f32 1.442695, %v856_v39  ;;  %1959 = vmatpush3.bf16.msra.mxu0 %v1958_v24 }
 0x36f   : > { %v1029_v41 = vpop.xlane.xlu0 %1028  ;;  %1960 = vmatprep.subr.bf16.mxu0 %v2333_v0 }
 0x370   : > { %2088 = vpow2.f32 %v857_v40  ;;  %v1030_v42 = vsub.f32 %v1024_v28, %v1029_v41  ;;  %v1805_v40 = vld [vmem:[#allocation6] ss:$0 sm:$0xff] }
 0x372   : > { %v1031_v43 = vmul.f32 1.442695, %v1030_v42  ;;  %1962 = vmatpush3.bf16.msra.mxu0 %v1961_v30 }
 0x373   : > { %v698_v44 = vpop.permute.xlu0 %697  ;;  %1969 = vmatprep.subr.bf16.mxu0 %v2333_v0 }
 0x374   : > { %2090 = vpow2.f32 %v1031_v43  ;;  %1876 = vmatpush3.msra.mxu1 %v698_v44 }
 0x375   : > { %1885 = vmatprep.subr.mxu1 %v2335_v1 }
 0x376   : > { %v2087_v45 = vpop.eup %2086 }
 0x377   : > { %1878 = vmatmul.mubr.msk.f32.vlgmr.msra.gmra.mrb[4].mxu1 %vm609_vm2, %v2087_v45  ;;  %v690_v51 = vsel %vm609_vm2, %v2087_v45, 0.0  ;;  %v1215_v56 = vpop.permute.xlu0 %1214 }
 0x378   : > { %1886 = vmatpush3.msra.mxu1 %v867_v46  ;;  %1887 = vmatprep.mubr.msk.f32.mxu1 %vm2334_vm0, %v2335_v1 }
 0x379   : > { %1895 = vmatprep.subr.mxu1 %v2335_v1 }
 0x37a   : > { %v2089_v47 = vpop.eup %2088 }
 0x37b   : > { %1888 = vmatmul.mubr.msk.f32.vlgmr.msra.gmra.mrb[6].mxu1 %vm609_vm2, %v2089_v47  ;;  %v859_v48 = vsel %vm609_vm2, %v2089_v47, 0.0 }
 0x37c   : > { %860 = vadd.xlane.f32.xlu1 %v859_v48  ;;  %1897 = vmatprep.mubr.msk.f32.mxu1 %vm2334_vm0, %v2335_v1 }
 0x37e   : > { %v2091_v49 = vpop.eup %2090 }
 0x37f   : > { %v1033_v50 = vsel %vm609_vm2, %v2091_v49, 0.0 }
 0x380   : > { %1034 = vadd.xlane.f32.xlu0 %v1033_v50  ;;  %691 = vadd.xlane.f32.xlu1 %v690_v51  ;;  %v1414_v51 = vld [vmem:[%s2882_s7 + $0x8] sm:$0xff] }
 0x39c   : > { %v1203_v52 = vpop.xlane.xlu1 %1202 }
 0x39d   : > { %v1204_v53 = vsub.f32 %v1198_v33, %v1203_v52 }
 0x39f   : > { %v1205_v54 = vmul.f32 1.442695, %v1204_v53  ;;  %v1416_v53 = vld [vmem:[%s2882_s7 + $0x18] sm:$0xff] }
 0x3a0   : > { %v1041_v55 = vpop.permute.xlu1 %1040 }
 0x3a1   : > { %2092 = vpow2.f32 %v1205_v54  ;;  %1896 = vmatpush3.msra.mxu1 %v1041_v55 }
 0x3a2   : > { %1898 = vmatmul.mubr.msk.f32.vlgmr.msra.gmra.mrb[8].mxu1 %vm609_vm2, %v2091_v49  ;;  %1905 = vmatprep.subr.mxu1 %v2335_v1 }
 0x3a3   : > { %1906 = vmatpush3.msra.mxu1 %v1215_v56  ;;  %1907 = vmatprep.mubr.msk.f32.mxu1 %vm2334_vm0, %v2335_v1 }
 0x3a4   : > { %1963 = vmatprep.subr.bf16.mxu1 %v2333_v0 }
 0x3ab   : > { %v2093_v57 = vpop.eup %2092 }
 0x3ac   : > { %1908 = vmatmul.mubr.msk.f32.vlgmr.msra.gmra.mrb[10].mxu1 %vm609_vm2, %v2093_v57  ;;  %v1207_v58 = vsel %vm609_vm2, %v2093_v57, 0.0 }
 0x3ad   : > { %1208 = vadd.xlane.f32.xlu0 %v1207_v58  ;;  %1929 = vmatprep.mubr.msk.f32.mxu1 %vm2334_vm0, %v2335_v1 }
 0x409   : > { %v861_v59 = vpop.xlane.xlu1 %860 }
 0x40d   : > { %v692_v60 = vpop.xlane.xlu1 %691  ;;  %v1035_v14 = vpop.xlane.xlu0 %1034 }
 0x40e   : > { %2094 = vrcp.f32 %v692_v60 }
 0x40f   : > { %2096 = vrcp.f32 %v861_v59 }
 0x410   : > { %2098 = vrcp.f32 %v1035_v14 }
 0x418   : > { %v2095_v61 = vpop.eup %2094 }
 0x419   : > { %v694_v62 = vmul.f32 %v2095_v61, %v692_v60  ;;  %v2097_v63 = vpop.eup %2096 }
 0x41a   : > { %v863_v2 = vmul.f32 %v2097_v63, %v861_v59  ;;  %v2099_v16 = vpop.eup %2098  ;;  %v1807_v59 = vld [vmem:[#allocation8] ss:$0 sm:$0xff] }
 0x41b   : > { %v695_v3 = vsub.f32 2.0, %v694_v62  ;;  %v1037_v17 = vmul.f32 %v2099_v16, %v1035_v14 }
 0x41c   : > { %v864_v4 = vsub.f32 2.0, %v863_v2  ;;  %v1524_v2 = vld [vmem:[%s2884_s9] sm:$0xff] }
 0x41d   : > { %v696_v5 = vmul.f32 %v2095_v61, %v695_v3  ;;  %v1038_v18 = vsub.f32 2.0, %v1037_v17  ;;  %v1808_v61 = vld [vmem:[#allocation9] ss:$0 sm:$0xff]  ;;  %v1525_v3 = vld [vmem:[%s2884_s9 + $0x8] sm:$0xff] }
 0x41e   : > { %v865_v10 = vmul.f32 %v2097_v63, %v864_v4  ;;  %v1970_v4 = vpack.c.bf16 %v1525_v3, %v1524_v2 }
 0x41f   : > { %v1039_v20 = vmul.f32 %v2099_v16, %v1038_v18 }
 0x43a   : > { %v1209_v15 = vpop.xlane.xlu0 %1208 }
 0x43b   : > { %2100 = vrcp.f32 %v1209_v15 }
 0x445   : > { %v2101_v19 = vpop.eup %2100 }
 0x446   : > { %v1211_v27 = vmul.f32 %v2101_v19, %v1209_v15  ;;  %v1809_v15 = vld [vmem:[#allocation11] ss:$0 sm:$0xff] }
 0x448   : > { %v1212_v31 = vsub.f32 2.0, %v1211_v27 }
 0x44a   : > { %v769_v6 = vpop.f32.mrb[4].mxu1  ;;  %v1213_v32 = vmul.f32 %v2101_v19, %v1212_v31 }
 0x44b   : > { %v773_v7 = vmul.f32 %v769_v6, %v696_v5  ;;  %v1879_v9 = vpop.f32.mrb[5].mxu1  ;;  %v1526_v5 = vld [vmem:[%s2884_s9 + $0x10] sm:$0xff]  ;;  %v1527_v6 = vld [vmem:[%s2884_s9 + $0x18] sm:$0xff] }
 0x44c   : > { %v1528_v9 = vld [vmem:[%s2884_s9 + $0x20] sm:$0xff] }
 0x44d   : > { %774 = vst.msk [vmem:[#allocation2] sm:$0xff] %vm609_vm2, %v773_v7  ;;  %v1973_v7 = vpack.c.bf16 %v1527_v6, %v1526_v5 }
 0x44e   : > { %v938_v11 = vpop.f32.mrb[6].mxu1 }
 0x44f   : > { %v942_v12 = vmul.f32 %v938_v11, %v865_v10  ;;  %v1889_v13 = vpop.f32.mrb[7].mxu1  ;;  %v1529_v10 = vld [vmem:[%s2884_s9 + $0x28] sm:$0xff] }
 0x450   : > { %v1976_v11 = vpack.c.bf16 %v1529_v10, %v1528_v9  ;;  %v1531_v13 = vld [vmem:[%s2884_s9 + $0x38] sm:$0xff] }
 0x451   : > { %944 = vrot.lane.b32.xlu0 %v942_v12, %s2347_s10  ;;  %v1530_v12 = vld [vmem:[%s2884_s9 + $0x30] sm:$0xff] }
 0x452   : > { %v1979_v14 = vpack.c.bf16 %v1531_v13, %v1530_v12 }
 0x475   : > { %v1112_v23 = vpop.f32.mrb[8].mxu1 }
 0x476   : > { %v1116_v28 = vmul.f32 %v1112_v23, %v1039_v20  ;;  %v1899_v29 = vpop.f32.mrb[9].mxu1 }
 0x478   : > { %1118 = vrot.lane.b32.xlu1 %v1116_v28, %s2348_s30  ;;  %s516_s30 = scalar_lea.vmem [#allocation12], %s1785_s19  ;;  %s2256_s19 = sshll.u32 %s2351_s14, 4  ;;  %s2257_s19 = int_to_ptr.vmem [resolvable:$false] %s2256_s19 }
 0x47f   : > { %v1286_v33 = vpop.f32.mrb[10].mxu1 }
 0x480   : > { %v1290_v34 = vmul.f32 %v1286_v33, %v1213_v32  ;;  %v1909_v35 = vpop.f32.mrb[11].mxu1 }
 0x482   : > { %1292 = vrot.lane.b32.xlu1 %v1290_v34, %s2349_s17  ;;  %s1658_s17 = sshll.u32 %s516_s30, 4  ;;  %s2832_s17 = int_to_ptr.vmem [resolvable:$true] %s1658_s17 }
 0x483   : > { %s2252_s22 = scalar_lea.vmem %s2832_s17, 128  ;;  %p2259_p3 = scmp.lt.s32.totalorder %s2832_s17, %s2257_s19 }
 0x484   : > { %p2253_p5 = scmp.ne.s32.totalorder %s2832_s17, %s2252_s22 }
 0x486   : > { %p2254_p9 = pnand %p2253_p5, %p2921_p7 }
 0x488   : > { %p2255_p4 = pneg %p2254_p9 }
 0x4c3   : > { %v945_v36 = vpop.permute.xlu0 %944 }
 0x4c4   : > { %948 = vst.msk [vmem:[#allocation2] sm:$0xff] %vm947_vm3, %v945_v36 }
 0x4ea   : > { %v1119_v37 = vpop.permute.xlu1 %1118 }
 0x4eb   : > { %1122 = vst.msk [vmem:[#allocation2] sm:$0xff] %vm1121_vm4, %v1119_v37 }
 0x4f4   : > { %v1293_v38 = vpop.permute.xlu1 %1292 }
 0x4f5   : > { %1296 = vst.msk [vmem:[#allocation2] sm:$0xff] %vm1295_vm5, %v1293_v38  ;;  %v2350_v38 = vmov -1.0  }
 0x4fc   : > { %v1297_v39 = vld [vmem:[#allocation2] sm:$0xff] }
 0x4fd   : > { %1919 = vmatmul.mubr.msk.f32.vlgmr.msra.gmra.mrb[6].mxu0 %vm532_vm1, %v1297_v39 }
 0x4fe   : > { %1948 = vmatprep.mubr.msk.f32.mxu0 %vm2334_vm0, %v2335_v1  ;;  %v1413_v1 = vld [vmem:[%s2882_s7] sm:$0xff]  ;;  %1971 = vmatpush3.bf16.msra.mxu0 %v1970_v4 }
 0x4ff   : > { %v1964_v52 = vpack.c.bf16 %v1414_v51, %v1413_v1  ;;  %1972 = vmatprep.subr.bf16.mxu0 %v2333_v0 }
 0x501   : > { %1965 = vmatpush3.bf16.msra.mxu1 %v1964_v52 }
 0x502   : > { %1966 = vmatprep.subr.bf16.mxu1 %v2333_v0  ;;  %1974 = vmatpush3.bf16.msra.mxu0 %v1973_v7 }
 0x503   : > { %1975 = vmatprep.subr.bf16.mxu0 %v2333_v0 }
 0x506   : > { %1977 = vmatpush3.bf16.msra.mxu0 %v1976_v11 }
 0x507   : > { %1978 = vmatprep.subr.bf16.mxu0 %v2333_v0 }
 0x50a   : > { %1980 = vmatpush3.bf16.msra.mxu0 %v1979_v14 }
 0x5d0   : > { %v1378_v41 = vpop.f32.mrb[6].mxu0 }
 0x5d1   : > { %v1379_v42 = vadd.f32 %v1805_v40, %v1378_v41  ;;  %v1920_v43 = vpop.f32.mrb[7].mxu0 }
 0x5d3   : > { %v1382_v44 = vadd.f32 %v1379_v42, %v2681_v8  ;;  %v1415_v8 = vld [vmem:[%s2882_s7 + $0x10] sm:$0xff] }
 0x5d4   : > { %v1967_v54 = vpack.c.bf16 %v1416_v53, %v1415_v8 }
 0x5d5   : > { %v1385_v45 = vsel %vm532_vm1, %v1382_v44, 0.0 }
 0x5d6   : > { %1386 = vadd.xlane.f32.xlu0 %v1385_v45  ;;  %1968 = vmatpush3.bf16.msra.mxu1 %v1967_v54 }
 0x663   : > { %v1387_v46 = vpop.xlane.xlu0 %1386 }
 0x664   : > { %v1389_v47 = vmul.f32 0.03125, %v1387_v46 }
 0x666   : > { %v1390_v48 = vsub.f32 %v1382_v44, %v1389_v47  ;;  %v1811_v44 = vld [vmem:[%s2917_s4] ss:$0 sm:$0xff]  ;;  %s2920_s4 = sld [smem:[#allocation23_spill]] }
 0x668   : > { %v1391_v49 = vmul.f32 %v1390_v48, %v1390_v48 }
 0x66a   : > { %v1392_v50 = vsel %vm532_vm1, %v1391_v49, 0.0 }
 0x66b   : > { %1393 = vadd.xlane.f32.xlu1 %v1392_v50 }
 0x66c   : > { %s2830_s0 = scalar_lea.hbm %s2920_s4, %s1816_s18 }
 0x6f8   : > { %v1394_v55 = vpop.xlane.xlu1 %1393 }
 0x6f9   : > { %v1395_v56 = vmul.f32 0.03125, %v1394_v55 }
 0x6fb   : > { %v1396_v57 = vadd.f32 1e-12, %v1395_v56 }
 0x6fd   : > { %2102 = vrsqrt.f32 %v1396_v57  ;;  %v1813_v57 = vld [vmem:[%s2918_s11] ss:$0 sm:$0xff]  ;;  %s2258_s11 = scalar_lea.vmem %s2257_s19, 256 }
 0x6fe   : > { %p2260_p13 = scmp.lt.s32.totalorder %s2258_s11, %s2252_s22 }
 0x700   : > { %p2261_p0 = por %p2260_p13, %p2259_p3 }
 0x702   : > { %p2262_p2 = pnand %p2261_p0, %p2255_p4 }
 0x707   : > { %v2103_v58 = vpop.eup %2102 }
 0x708   : > { %v1398_v60 = vmul.f32 %v2103_v58, %v1390_v48 }
 0x70a   : > { %v1405_v62 = vmul.f32 %v1807_v59, %v1398_v60  ;;  %v1814_v59 = vld [vmem:[%s2919_s21] ss:$0 sm:$0xff] }
 0x70c   : > { %v1412_v63 = vadd.f32 %v1808_v61, %v1405_v62 }
 0x70e   : > { %1930 = vmatmul.mubr.msk.f32.vlgmr.msra.gmra.mrb[12].mxu1 %vm532_vm1, %v1412_v63 }
 0x7e1   : > { %v1493_v16 = vpop.f32.mrb[12].mxu1 }
 0x7e2   : > { %v1494_v17 = vadd.f32 %v1809_v15, %v1493_v16  ;;  %v1931_v18 = vpop.f32.mrb[13].mxu1 }
 0x7e4   : > { %v1498_v19 = vmul.f32 0.70710677, %v1494_v17  ;;  %v1497_v41 = vmul.f32 0.5, %v1494_v17 }
 0x7e6   : > { %v1501_v20 = vand.u32 2147483647, %v1498_v19  ;;  %vm1499_vm6 = vcmp.ge.f32.partialorder %v1498_v19, 0.0 }
 0x7e7   : > { %v1500_v39 = vsel %vm1499_vm6, 1.0, %v2350_v38 }
 0x7e8   : > { %v1502_v21 = vmul.f32 0.3275911, %v1501_v20  ;;  %v1515_v0 = vsub.f32 0.0, %v1501_v20 }
 0x7ea   : > { %v1503_v22 = vadd.f32 1.0, %v1502_v21  ;;  %v1516_v24 = vmul.f32 %v1515_v0, %v1501_v20 }
 0x7ec   : > { %2104 = vrcp.f32 %v1503_v22  ;;  %v1517_v27 = vmul.f32 1.442695, %v1516_v24 }
 0x7ee   : > { %2106 = vpow2.f32 %v1517_v27 }
 0x7f6   : > { %v2105_v23 = vpop.eup %2104 }
 0x7f7   : > { %v1506_v25 = vmul.f32 1.0614054, %v2105_v23 }
 0x7f8   : > { %v2107_v35 = vpop.eup %2106 }
 0x7f9   : > { %v1507_v26 = vadd.f32 -1.4531521, %v1506_v25 }
 0x7fb   : > { %v1508_v28 = vmul.f32 %v2105_v23, %v1507_v26 }
 0x7fd   : > { %v1509_v29 = vadd.f32 1.4214138, %v1508_v28 }
 0x7ff   : > { %v1510_v30 = vmul.f32 %v2105_v23, %v1509_v29 }
 0x801   : > { %v1511_v31 = vadd.f32 -0.28449672, %v1510_v30 }
 0x803   : > { %v1512_v32 = vmul.f32 %v2105_v23, %v1511_v31 }
 0x805   : > { %v1513_v33 = vadd.f32 0.2548296, %v1512_v32 }
 0x807   : > { %v1514_v34 = vmul.f32 %v2105_v23, %v1513_v33 }
 0x809   : > { %v1519_v36 = vmul.f32 %v2107_v35, %v1514_v34 }
 0x80b   : > { %v1520_v37 = vsub.f32 1.0, %v1519_v36 }
 0x80d   : > { %v1521_v40 = vmul.f32 %v1520_v37, %v1500_v39 }
 0x80f   : > { %v1522_v42 = vadd.f32 1.0, %v1521_v40 }
 0x811   : > { %v1523_v43 = vmul.f32 %v1522_v42, %v1497_v41 }
 0x813   : > { %1949 = vmatmul.mubr.msk.f32.vlgmr.msra.gmra.mrb[8].mxu0 %vm1539_vm7, %v1523_v43 }
 0x8e6   : > { %v1609_v45 = vpop.f32.mrb[8].mxu0 }
 0x8e7   : > { %v1610_v46 = vadd.f32 %v1811_v44, %v1609_v45  ;;  %v1950_v47 = vpop.f32.mrb[9].mxu0 }
 0x8e9   : > { %v1613_v48 = vadd.f32 %v1610_v46, %v1412_v63 }
 0x8eb   : > { %v1616_v49 = vsel %vm532_vm1, %v1613_v48, 0.0 }
 0x8ec   : > { %1617 = vadd.xlane.f32.xlu0 %v1616_v49 }
 0x979   : > { %v1618_v50 = vpop.xlane.xlu0 %1617 }
 0x97a   : > { %v1619_v1 = vmul.f32 0.03125, %v1618_v50 }
 0x97c   : > { %v1620_v51 = vsub.f32 %v1613_v48, %v1619_v1 }
 0x97e   : > { %v1621_v52 = vmul.f32 %v1620_v51, %v1620_v51 }
 0x980   : > { %v1622_v8 = vsel %vm532_vm1, %v1621_v52, 0.0 }
 0x981   : > { %1623 = vadd.xlane.f32.xlu0 %v1622_v8 }
 0xa0e   : > { %v1624_v53 = vpop.xlane.xlu0 %1623 }
 0xa0f   : > { %v1625_v54 = vmul.f32 0.03125, %v1624_v53 }
 0xa11   : > { %v1626_v55 = vadd.f32 1e-12, %v1625_v54 }
 0xa13   : > { %2108 = vrsqrt.f32 %v1626_v55 }
 0xa1d   : > { %v2109_v56 = vpop.eup %2108 }
 0xa1e   : > { %v1628_v58 = vmul.f32 %v2109_v56, %v1620_v51 }
 0xa20   : > { %v1635_v60 = vmul.f32 %v1813_v57, %v1628_v58 }
 0xa22   : > { %v1642_v61 = vadd.f32 %v1814_v59, %v1635_v60 }
 0xa24   : > { %1643 = vst.msk [vmem:[%s516_s30] sm:$0xff] %vm532_vm1, %v1642_v61 }
 0xa25   : > { %2265 = shalt.err (!%p2262_p2)
}
 0xa26   : > { %s2266_s5 = scalar_lea.hbm %s2830_s0, 128  ;;  %s2270_s21 = scalar_lea.hbm %s2920_s4, 256 }
 0xa27   : > { %p2267_p8 = scmp.ne.s32.totalorder %s2830_s0, %s2266_s5  ;;  %p2271_p12 = scmp.lt.u32.totalorder %s2830_s0, %s2920_s4 }
 0xa28   : > { %p2272_p1 = scmp.lt.u32.totalorder %s2270_s21, %s2266_s5  ;;  %p2274_p5 = scmp.lt.u32.totalorder %s2266_s5, %s2830_s0 }
 0xa29   : > { %p2268_p10 = pnand %p2267_p8, %p2921_p7 }
 0xa2a   : > { %p2273_p6 = por %p2272_p1, %p2271_p12 }
 0xa2b   : > { %p2269_p11 = pneg %p2268_p10 }
 0xa2c   : > { %p2275_p9 = por %p2274_p5, %p2273_p6 }
 0xa2e   : > { %p2276_p4 = pnand %p2275_p9, %p2269_p11 }
 0xa30   : > { %2279 = shalt.err (!%p2276_p4)
}
 0xa31   : > { %1999 = dma.vmem_to_hbm [thread:$0]  (%p2921_p7), %s2832_s17, 128, %s2830_s0, %s1645_s15  }
 0xa32 PF: > { %s1670_s16 = sand.u32 1, %s2314_s25   ;;  %p2922_p3 = scmp.ne.s32.totalorder %s2909_s23, 0 }
 0xa33   : > { %p2923_p13 = scmp.ge.s32.totalorder %s2326_s28, 2  ;;  %s1671_s10 = scalar_lea.sflag [#allocation5], %s1670_s16 }
 0xa35   : > { %p2019_p0 = pnand %p2923_p13, %p2922_p3 }
 0xa37   : > { %2309 = dma.done.wait (!%p2019_p0), %s1671_s10, 128  }
 0xa38   : > { %2311 = vsyncadd (!%p2019_p0), %s1671_s10, 4294967168  ;;  %p28_p2 = scmp.ge.s32.totalorder %s2568_s20, 4   ;;  %s2924_s25 = smov %s2318_s26 }
 0xa39   : > { %s2925_s26 = smov %s2322_s27  ;;  %s2926_s27 = smov %s2579_s29 }
 0xa3a   : > { %s2927_s28 = smov %s2568_s20  ;;  %30 = sbr.rel (!%p28_p2) target bundleno = 15 (0xf), region = 136 }
 0xa41   :  { %1676 = vsyncpa [#allocation4], 1 }
 0xa42   :  { %1678 = vsyncpa [#allocation4 + $0x1], 1 }
 0xa43   :  { %1679 = vsyncpa [#allocation7], 1 }
 0xa44   :  { %1680 = vsyncpa [#allocation10], 1 }
 0xa45   :  { %1681 = vsyncpa [#allocation5], 1 }
 0xa46   :  { %1683 = vsyncpa [#allocation5 + $0x1], 1 }

</bundles_post_ra>
